<compile_context>
chip_gen: v6e
topology: v6e:2x2x1
jax: 0.10.0
libtpu: 0.0.40
codegen_flags: <defaults>
</compile_context>

<pallas_src>
import functools

import jax
import jax.numpy as jnp
from jax.experimental import pallas as pl
from jax.experimental.pallas import tpu as pltpu


# MXU operand dtype (accumulation stays f32 via preferred_element_type).
MXU_DTYPE = jnp.bfloat16

IMG_MEAN = jnp.array([0.48145466, 0.4578275, 0.40821073], dtype=jnp.float32)
IMG_STD = jnp.array([0.26862954, 0.26130258, 0.27577711], dtype=jnp.float32)


# ----------------------------------------------------------------------------
# Fused Pallas kernel: one program = one image's full CLIP vision forward.
# ----------------------------------------------------------------------------

def _clip_fused_kernel(patches_ref, pw_ref, pb_ref, cls_ref, pos_ref,
                       pre_g_ref, pre_b_ref,
                       ln1_g_ref, ln1_b_ref, wqkv_ref, bqkv_ref,
                       wo_ref, bo_ref,
                       ln2_g_ref, ln2_b_ref, w1_ref, b1_ref, w2_ref, b2_ref,
                       post_g_ref, post_b_ref, proj_w_ref,
                       out_ref, seq_ref,
                       *, heads, layers, eps, mxu_dtype):
    S, D = seq_ref.shape
    Dh = D // heads
    scale = Dh ** -0.5

    def mm(a, w):
        # MXU matmul: bf16 operands, f32 accumulation.
        return jnp.dot(a.astype(mxu_dtype), w.astype(mxu_dtype),
                       preferred_element_type=jnp.float32)

    def ln(xv, g, b):
        # LayerNorm in f32 (CLIP eps = 1e-5); rsqrt goes to the EUP slot.
        xv = xv.astype(jnp.float32)
        mu = jnp.mean(xv, axis=-1, keepdims=True)
        var = jnp.mean((xv - mu) ** 2, axis=-1, keepdims=True)
        return (xv - mu) * jax.lax.rsqrt(var + eps) * g + b

    # --- patch embedding (processor normalization already folded in) -------
    pe = mm(patches_ref[0], pw_ref[...]) + pb_ref[...]             # [N, D]

    # --- prepend CLS token + positional embedding (assembled in VMEM) ------
    seq_ref[0:1, :] = cls_ref[...] + pos_ref[0:1, :]
    seq_ref[1:S, :] = pe + pos_ref[1:S, :]
    h = ln(seq_ref[...], pre_g_ref[...], pre_b_ref[...])           # pre-LN

    # --- transformer encoder layers (pre-LN, QuickGELU MLP) ----------------
    for l in range(layers):
        # ---- self-attention block ------------------------------------------
        res = h
        x_ln = ln(h, ln1_g_ref[l], ln1_b_ref[l])
        qkv = mm(x_ln, wqkv_ref[l]) + bqkv_ref[l]                  # [S, 3D]
        wo_l = wo_ref[l]                                           # [D, D]

        # Head-merge + out-projection as per-head block-matmul accumulation:
        #   concat_h(o_h) @ Wo == sum_h o_h @ Wo[h*Dh:(h+1)*Dh, :]
        # -> everything stays in vregs, no masked narrow stores to scratch.
        o = jnp.zeros((S, D), jnp.float32)
        for hd in range(heads):
            lo, hi = hd * Dh, (hd + 1) * Dh
            q_h = qkv[:, lo:hi] * scale           # HF CLIP scales the queries
            k_h = qkv[:, D + lo:D + hi]
            v_h = qkv[:, 2 * D + lo:2 * D + hi]
            s = jnp.einsum('qd,kd->qk',
                           q_h.astype(mxu_dtype), k_h.astype(mxu_dtype),
                           preferred_element_type=jnp.float32)
            m = jnp.max(s, axis=-1, keepdims=True)                 # f32 softmax
            p = jnp.exp(s - m)
            p = p * pl.reciprocal(jnp.sum(p, axis=-1, keepdims=True),
                                  approx=True)
            o_h = jnp.einsum('qk,kd->qd',
                             p.astype(mxu_dtype), v_h.astype(mxu_dtype),
                             preferred_element_type=jnp.float32)
            o = o + mm(o_h, wo_l[lo:hi, :])       # sublane-aligned Wo slice
        h = res + o + bo_ref[l]

        # ---- MLP block (QuickGELU, f32 elementwise) --------------------------
        res = h
        x_ln = ln(h, ln2_g_ref[l], ln2_b_ref[l])
        m1 = mm(x_ln, w1_ref[l]) + b1_ref[l]
        m1 = m1 * jax.nn.sigmoid(1.702 * m1)                       # QuickGELU
        h = res + (mm(m1, w2_ref[l]) + b2_ref[l])

    # --- CLS pooling, post-LN, visual projection (no bias) ------------------
    pooled = ln(h[0:1, :], post_g_ref[...], post_b_ref[...])       # [1, D]
    out_ref[0] = mm(pooled, proj_w_ref[...]).astype(out_ref.dtype)


# ----------------------------------------------------------------------------
# Wrapper: processor-normalize fold + patch extraction + fused pallas_call
# ----------------------------------------------------------------------------

@functools.partial(jax.jit, static_argnames=("patch_size", "num_heads"))
def clip_wrapper_forward(x, params, *, patch_size, num_heads):
    """x: NCHW float32 images in [0, 1]  ->  image features [B, proj_dim]."""
    B, C, H, W = x.shape
    ps = patch_size
    Hp, Wp = H // ps, W // ps
    N = Hp * Wp
    S = N + 1
    F = C * ps * ps
    D = params["patch_w"].shape[1]
    P = params["proj_w"].shape[1]
    L = params["wqkv"].shape[0]

    # Processor normalization (x - mean)/std folded into the linear patch
    # embedding:  ((x - mean)/std) @ W + b == x @ (W * inv_std_row) +
    #             (b - (mean * inv_std) @ W).   Exact, one-time, tiny.
    inv_std = jnp.repeat(1.0 / params["img_std"], ps * ps)         # [F]
    mean = jnp.repeat(params["img_mean"], ps * ps)                 # [F]
    pw = params["patch_w"] * inv_std[:, None]                      # [F, D]
    pb = params["patch_b"] - (mean * inv_std)[None, :] @ params["patch_w"]

    # Patch extraction: stride-ps conv == patch flatten + matmul (layout only,
    # channel-major flatten to match the folded weight layout).
    patches = (x.reshape(B, C, Hp, ps, Wp, ps)
                 .transpose(0, 2, 4, 1, 3, 5)
                 .reshape(B, N, F))

    kernel = functools.partial(_clip_fused_kernel, heads=num_heads, layers=L,
                               eps=1e-5, mxu_dtype=MXU_DTYPE)

    def full(shape):
        nd = len(shape)
        return pl.BlockSpec(shape, lambda b, _n=nd: (0,) * _n)

    out = pl.pallas_call(
        kernel,
        out_shape=jax.ShapeDtypeStruct((B, 1, P), jnp.float32),
        grid=(B,),
        in_specs=[
            pl.BlockSpec((1, N, F), lambda b: (b, 0, 0)),          # patches
            full(pw.shape), full(pb.shape),                        # patch embed
            full(params["class_emb"].shape), full(params["pos_emb"].shape),
            full(params["pre_ln_g"].shape), full(params["pre_ln_b"].shape),
            full(params["ln1_g"].shape), full(params["ln1_b"].shape),
            full(params["wqkv"].shape), full(params["bqkv"].shape),
            full(params["wo"].shape), full(params["bo"].shape),
            full(params["ln2_g"].shape), full(params["ln2_b"].shape),
            full(params["w1"].shape), full(params["b1"].shape),
            full(params["w2"].shape), full(params["b2"].shape),
            full(params["post_ln_g"].shape), full(params["post_ln_b"].shape),
            full(params["proj_w"].shape),
        ],
        out_specs=pl.BlockSpec((1, 1, P), lambda b: (b, 0, 0)),
        scratch_shapes=[pltpu.VMEM((S, D), jnp.float32)],          # seq buffer
        compiler_params=pltpu.CompilerParams(
            dimension_semantics=("parallel",)),
    )(patches, pw, pb,
      params["class_emb"], params["pos_emb"],
      params["pre_ln_g"], params["pre_ln_b"],
      params["ln1_g"], params["ln1_b"],
      params["wqkv"], params["bqkv"],
      params["wo"], params["bo"],
      params["ln2_g"], params["ln2_b"],
      params["w1"], params["b1"],
      params["w2"], params["b2"],
      params["post_ln_g"], params["post_ln_b"],
      params["proj_w"])

    return out.reshape(B, P)


# ----------------------------------------------------------------------------
# Synthetic small CLIP vision model parameters (deterministic init)
# ----------------------------------------------------------------------------

def init_params(key, *, C=3, patch_size=8, hidden=32, heads=4, layers=2,
                mlp=128, proj_dim=16, seq=5):
    def nrm(k, shape, scale=0.02):
        return (scale * jax.random.normal(k, shape)).astype(jnp.float32)

    D = hidden
    F = C * patch_size * patch_size
    ki = iter(jax.random.split(key, 16))
    params = {
        # conv weight [D, C, ps, ps] flattened to [C*ps*ps, D]; CLIP patch
        # conv has no bias (zeros kept so the normalize fold has a target).
        "patch_w": nrm(next(ki), (F, D)),
        "patch_b": jnp.zeros((1, D), jnp.float32),
        "class_emb": nrm(next(ki), (1, D)),
        "pos_emb": nrm(next(ki), (seq, D)),
        "pre_ln_g": jnp.ones((1, D), jnp.float32),
        "pre_ln_b": jnp.zeros((1, D), jnp.float32),
        # per-layer weights stacked on a leading [layers] axis
        "ln1_g": jnp.ones((layers, 1, D), jnp.float32),
        "ln1_b": jnp.zeros((layers, 1, D), jnp.float32),
        "wqkv": nrm(next(ki), (layers, D, 3 * D)),     # fused Q|K|V
        "bqkv": nrm(next(ki), (layers, 1, 3 * D)),
        "wo": nrm(next(ki), (layers, D, D)),
        "bo": nrm(next(ki), (layers, 1, D)),
        "ln2_g": jnp.ones((layers, 1, D), jnp.float32),
        "ln2_b": jnp.zeros((layers, 1, D), jnp.float32),
        "w1": nrm(next(ki), (layers, D, mlp)),
        "b1": nrm(next(ki), (layers, 1, mlp)),
        "w2": nrm(next(ki), (layers, mlp, D)),
        "b2": nrm(next(ki), (layers, 1, D)),
        "post_ln_g": jnp.ones((1, D), jnp.float32),
        "post_ln_b": jnp.zeros((1, D), jnp.float32),
        "proj_w": nrm(next(ki), (D, proj_dim)),        # visual_projection (no bias)
        "img_mean": IMG_MEAN,
        "img_std": IMG_STD,
    }
    return params


# ----------------------------------------------------------------------------
# Main
# ----------------------------------------------------------------------------

if __name__ == "__main__":
    B, C, H, W = 2, 3, 16, 16          # small image batch, already at model res
    PATCH, HIDDEN, HEADS, LAYERS = 8, 32, 4, 2
    MLP, PROJ = 128, 16
    SEQ = (H // PATCH) * (W // PATCH) + 1

    key = jax.random.PRNGKey(0)
    k_img, k_par = jax.random.split(key)
    x = jax.random.uniform(k_img, (B, C, H, W), dtype=jnp.float32)  # [0,1] images
    params = init_params(k_par, C=C, patch_size=PATCH, hidden=HIDDEN,
                         heads=HEADS, layers=LAYERS, mlp=MLP,
                         proj_dim=PROJ, seq=SEQ)

    feats = clip_wrapper_forward(x, params, patch_size=PATCH, num_heads=HEADS)
    feats = jax.block_until_ready(feats)
    assert feats.shape == (B, PROJ) and feats.dtype == jnp.float32
    assert bool(jnp.all(jnp.isfinite(feats)))
    print("KERNEL_OK")
</pallas_src>

<mosaic_0001>
module attributes {stable_mosaic.version = 11 : i64} {
  func.func @_clip_fused_kernel(%arg0: i32, %arg1: memref<1x4x192xf32, #tpu.memory_space<vmem>>, %arg2: memref<192x32xf32, #tpu.memory_space<vmem>>, %arg3: memref<1x32xf32, #tpu.memory_space<vmem>>, %arg4: memref<1x32xf32, #tpu.memory_space<vmem>>, %arg5: memref<5x32xf32, #tpu.memory_space<vmem>>, %arg6: memref<1x32xf32, #tpu.memory_space<vmem>>, %arg7: memref<1x32xf32, #tpu.memory_space<vmem>>, %arg8: memref<2x1x32xf32, #tpu.memory_space<vmem>>, %arg9: memref<2x1x32xf32, #tpu.memory_space<vmem>>, %arg10: memref<2x32x96xf32, #tpu.memory_space<vmem>>, %arg11: memref<2x1x96xf32, #tpu.memory_space<vmem>>, %arg12: memref<2x32x32xf32, #tpu.memory_space<vmem>>, %arg13: memref<2x1x32xf32, #tpu.memory_space<vmem>>, %arg14: memref<2x1x32xf32, #tpu.memory_space<vmem>>, %arg15: memref<2x1x32xf32, #tpu.memory_space<vmem>>, %arg16: memref<2x32x128xf32, #tpu.memory_space<vmem>>, %arg17: memref<2x1x128xf32, #tpu.memory_space<vmem>>, %arg18: memref<2x128x32xf32, #tpu.memory_space<vmem>>, %arg19: memref<2x1x32xf32, #tpu.memory_space<vmem>>, %arg20: memref<1x32xf32, #tpu.memory_space<vmem>>, %arg21: memref<1x32xf32, #tpu.memory_space<vmem>>, %arg22: memref<32x16xf32, #tpu.memory_space<vmem>>, %arg23: memref<1x1x16xf32, #tpu.memory_space<vmem>>, %arg24: memref<5x32xf32, #tpu.memory_space<vmem>>) attributes {dimension_semantics = [#tpu.dimension_semantics<parallel>], iteration_bounds = array<i64: 2>, scalar_prefetch = 0 : i64, scratch_operands = 1 : i64, tpu.core_type = #tpu.core_type<tc>, window_params = [{transform_indices = @transform_0, window_bounds = array<i64: 1, 4, 192>}, {pipeline_mode = #tpu.pipeline_mode<synchronous>, transform_indices = @transform_1, window_bounds = array<i64: 192, 32>}, {pipeline_mode = #tpu.pipeline_mode<synchronous>, transform_indices = @transform_2, window_bounds = array<i64: 1, 32>}, {pipeline_mode = #tpu.pipeline_mode<synchronous>, transform_indices = @transform_3, window_bounds = array<i64: 1, 32>}, {pipeline_mode = #tpu.pipeline_mode<synchronous>, transform_indices = @transform_4, window_bounds = array<i64: 5, 32>}, {pipeline_mode = #tpu.pipeline_mode<synchronous>, transform_indices = @transform_5, window_bounds = array<i64: 1, 32>}, {pipeline_mode = #tpu.pipeline_mode<synchronous>, transform_indices = @transform_6, window_bounds = array<i64: 1, 32>}, {pipeline_mode = #tpu.pipeline_mode<synchronous>, transform_indices = @transform_7, window_bounds = array<i64: 2, 1, 32>}, {pipeline_mode = #tpu.pipeline_mode<synchronous>, transform_indices = @transform_8, window_bounds = array<i64: 2, 1, 32>}, {pipeline_mode = #tpu.pipeline_mode<synchronous>, transform_indices = @transform_9, window_bounds = array<i64: 2, 32, 96>}, {pipeline_mode = #tpu.pipeline_mode<synchronous>, transform_indices = @transform_10, window_bounds = array<i64: 2, 1, 96>}, {pipeline_mode = #tpu.pipeline_mode<synchronous>, transform_indices = @transform_11, window_bounds = array<i64: 2, 32, 32>}, {pipeline_mode = #tpu.pipeline_mode<synchronous>, transform_indices = @transform_12, window_bounds = array<i64: 2, 1, 32>}, {pipeline_mode = #tpu.pipeline_mode<synchronous>, transform_indices = @transform_13, window_bounds = array<i64: 2, 1, 32>}, {pipeline_mode = #tpu.pipeline_mode<synchronous>, transform_indices = @transform_14, window_bounds = array<i64: 2, 1, 32>}, {pipeline_mode = #tpu.pipeline_mode<synchronous>, transform_indices = @transform_15, window_bounds = array<i64: 2, 32, 128>}, {pipeline_mode = #tpu.pipeline_mode<synchronous>, transform_indices = @transform_16, window_bounds = array<i64: 2, 1, 128>}, {pipeline_mode = #tpu.pipeline_mode<synchronous>, transform_indices = @transform_17, window_bounds = array<i64: 2, 128, 32>}, {pipeline_mode = #tpu.pipeline_mode<synchronous>, transform_indices = @transform_18, window_bounds = array<i64: 2, 1, 32>}, {pipeline_mode = #tpu.pipeline_mode<synchronous>, transform_indices = @transform_19, window_bounds = array<i64: 1, 32>}, {pipeline_mode = #tpu.pipeline_mode<synchronous>, transform_indices = @transform_20, window_bounds = array<i64: 1, 32>}, {pipeline_mode = #tpu.pipeline_mode<synchronous>, transform_indices = @transform_21, window_bounds = array<i64: 32, 16>}, {transform_indices = @transform_22, window_bounds = array<i64: 1, 1, 16>}]} {
    %c0 = arith.constant 0 : index
    %c0_0 = arith.constant 0 : index
    %c0_1 = arith.constant 0 : index
    %0 = vector.load %arg1[%c0, %c0_0, %c0_1] : memref<1x4x192xf32, #tpu.memory_space<vmem>>, vector<1x4x192xf32>
    %1 = vector.shape_cast %0 : vector<1x4x192xf32> to vector<4x192xf32>
    %c0_2 = arith.constant 0 : index
    %c0_3 = arith.constant 0 : index
    %2 = vector.load %arg2[%c0_2, %c0_3] : memref<192x32xf32, #tpu.memory_space<vmem>>, vector<192x32xf32>
    %3 = arith.truncf %1 : vector<4x192xf32> to vector<4x192xbf16>
    %4 = arith.truncf %2 : vector<192x32xf32> to vector<192x32xbf16>
    %cst = arith.constant dense<0.000000e+00> : vector<4x32xf32>
    %5 = tpu.matmul %3, %4, %cst {dimension_numbers = #tpu.dot_dimension_numbers<[1], [0], [0], [1], [0, 0, 1, 1], [], []>} : vector<4x192xbf16>, vector<192x32xbf16>, vector<4x32xf32> -> vector<4x32xf32>
    %c0_4 = arith.constant 0 : index
    %c0_5 = arith.constant 0 : index
    %6 = vector.load %arg3[%c0_4, %c0_5] : memref<1x32xf32, #tpu.memory_space<vmem>>, vector<1x32xf32>
    %7 = vector.broadcast %6 : vector<1x32xf32> to vector<4x32xf32>
    %8 = arith.addf %5, %7 : vector<4x32xf32>
    %c0_6 = arith.constant 0 : index
    %c0_7 = arith.constant 0 : index
    %9 = vector.load %arg4[%c0_6, %c0_7] : memref<1x32xf32, #tpu.memory_space<vmem>>, vector<1x32xf32>
    %c0_8 = arith.constant 0 : index
    %c0_9 = arith.constant 0 : index
    %10 = vector.load %arg5[%c0_8, %c0_9] : memref<5x32xf32, #tpu.memory_space<vmem>>, vector<1x32xf32>
    %11 = arith.addf %9, %10 : vector<1x32xf32>
    %c0_10 = arith.constant 0 : index
    %c0_11 = arith.constant 0 : index
    %12 = vector.load %arg24[%c0_10, %c0_11] : memref<5x32xf32, #tpu.memory_space<vmem>>, vector<1x32xf32>
    tpu.vector_store %arg24[%c0_10, %c0_11], %11 {strides = array<i32>} : memref<5x32xf32, #tpu.memory_space<vmem>>, vector<1x32xf32>,
    %c1 = arith.constant 1 : index
    %c0_12 = arith.constant 0 : index
    %13 = vector.load %arg5[%c1, %c0_12] : memref<5x32xf32, #tpu.memory_space<vmem>>, vector<4x32xf32>
    %14 = arith.addf %8, %13 : vector<4x32xf32>
    %c1_13 = arith.constant 1 : index
    %c0_14 = arith.constant 0 : index
    %15 = vector.load %arg24[%c1_13, %c0_14] : memref<5x32xf32, #tpu.memory_space<vmem>>, vector<4x32xf32>
    tpu.vector_store %arg24[%c1_13, %c0_14], %14 {strides = array<i32>} : memref<5x32xf32, #tpu.memory_space<vmem>>, vector<4x32xf32>,
    %c0_15 = arith.constant 0 : index
    %c0_16 = arith.constant 0 : index
    %16 = vector.load %arg24[%c0_15, %c0_16] : memref<5x32xf32, #tpu.memory_space<vmem>>, vector<5x32xf32>
    %c0_17 = arith.constant 0 : index
    %c0_18 = arith.constant 0 : index
    %17 = vector.load %arg6[%c0_17, %c0_18] : memref<1x32xf32, #tpu.memory_space<vmem>>, vector<1x32xf32>
    %c0_19 = arith.constant 0 : index
    %c0_20 = arith.constant 0 : index
    %18 = vector.load %arg7[%c0_19, %c0_20] : memref<1x32xf32, #tpu.memory_space<vmem>>, vector<1x32xf32>
    %cst_21 = arith.constant dense<0.000000e+00> : vector<5xf32>
    %19 = vector.multi_reduction <add>, %16, %cst_21 [1] : vector<5x32xf32> to vector<5xf32>
    %20 = vector.shape_cast %19 : vector<5xf32> to vector<5x1xf32>
    %cst_22 = arith.constant 3.200000e+01 : f32
    %21 = vector.broadcast %cst_22 : f32 to vector<5x1xf32>
    %22 = arith.divf %20, %21 : vector<5x1xf32>
    %23 = vector.broadcast %22 : vector<5x1xf32> to vector<5x32xf32>
    %24 = arith.subf %16, %23 : vector<5x32xf32>
    %25 = arith.mulf %24, %24 : vector<5x32xf32>
    %cst_23 = arith.constant dense<0.000000e+00> : vector<5xf32>
    %26 = vector.multi_reduction <add>, %25, %cst_23 [1] : vector<5x32xf32> to vector<5xf32>
    %27 = vector.shape_cast %26 : vector<5xf32> to vector<5x1xf32>
    %cst_24 = arith.constant 3.200000e+01 : f32
    %28 = vector.broadcast %cst_24 : f32 to vector<5x1xf32>
    %29 = arith.divf %27, %28 : vector<5x1xf32>
    %30 = vector.broadcast %22 : vector<5x1xf32> to vector<5x32xf32>
    %31 = arith.subf %16, %30 : vector<5x32xf32>
    %cst_25 = arith.constant 9.99999974E-6 : f32
    %32 = vector.broadcast %cst_25 : f32 to vector<5x1xf32>
    %33 = arith.addf %29, %32 : vector<5x1xf32>
    %34 = math.rsqrt %33 : vector<5x1xf32>
    %35 = vector.broadcast %34 : vector<5x1xf32> to vector<5x32xf32>
    %36 = arith.mulf %31, %35 : vector<5x32xf32>
    %37 = vector.broadcast %17 : vector<1x32xf32> to vector<5x32xf32>
    %38 = arith.mulf %36, %37 : vector<5x32xf32>
    %39 = vector.broadcast %18 : vector<1x32xf32> to vector<5x32xf32>
    %40 = arith.addf %38, %39 : vector<5x32xf32>
    %c0_26 = arith.constant 0 : index
    %c0_27 = arith.constant 0 : index
    %c0_28 = arith.constant 0 : index
    %41 = vector.load %arg8[%c0_26, %c0_27, %c0_28] : memref<2x1x32xf32, #tpu.memory_space<vmem>>, vector<1x1x32xf32>
    %42 = vector.shape_cast %41 : vector<1x1x32xf32> to vector<1x32xf32>
    %c0_29 = arith.constant 0 : index
    %c0_30 = arith.constant 0 : index
    %c0_31 = arith.constant 0 : index
    %43 = vector.load %arg9[%c0_29, %c0_30, %c0_31] : memref<2x1x32xf32, #tpu.memory_space<vmem>>, vector<1x1x32xf32>
    %44 = vector.shape_cast %43 : vector<1x1x32xf32> to vector<1x32xf32>
    %cst_32 = arith.constant dense<0.000000e+00> : vector<5xf32>
    %45 = vector.multi_reduction <add>, %40, %cst_32 [1] : vector<5x32xf32> to vector<5xf32>
    %46 = vector.shape_cast %45 : vector<5xf32> to vector<5x1xf32>
    %cst_33 = arith.constant 3.200000e+01 : f32
    %47 = vector.broadcast %cst_33 : f32 to vector<5x1xf32>
    %48 = arith.divf %46, %47 : vector<5x1xf32>
    %49 = vector.broadcast %48 : vector<5x1xf32> to vector<5x32xf32>
    %50 = arith.subf %40, %49 : vector<5x32xf32>
    %51 = arith.mulf %50, %50 : vector<5x32xf32>
    %cst_34 = arith.constant dense<0.000000e+00> : vector<5xf32>
    %52 = vector.multi_reduction <add>, %51, %cst_34 [1] : vector<5x32xf32> to vector<5xf32>
    %53 = vector.shape_cast %52 : vector<5xf32> to vector<5x1xf32>
    %cst_35 = arith.constant 3.200000e+01 : f32
    %54 = vector.broadcast %cst_35 : f32 to vector<5x1xf32>
    %55 = arith.divf %53, %54 : vector<5x1xf32>
    %56 = vector.broadcast %48 : vector<5x1xf32> to vector<5x32xf32>
    %57 = arith.subf %40, %56 : vector<5x32xf32>
    %cst_36 = arith.constant 9.99999974E-6 : f32
    %58 = vector.broadcast %cst_36 : f32 to vector<5x1xf32>
    %59 = arith.addf %55, %58 : vector<5x1xf32>
    %60 = math.rsqrt %59 : vector<5x1xf32>
    %61 = vector.broadcast %60 : vector<5x1xf32> to vector<5x32xf32>
    %62 = arith.mulf %57, %61 : vector<5x32xf32>
    %63 = vector.broadcast %42 : vector<1x32xf32> to vector<5x32xf32>
    %64 = arith.mulf %62, %63 : vector<5x32xf32>
    %65 = vector.broadcast %44 : vector<1x32xf32> to vector<5x32xf32>
    %66 = arith.addf %64, %65 : vector<5x32xf32>
    %c0_37 = arith.constant 0 : index
    %c0_38 = arith.constant 0 : index
    %c0_39 = arith.constant 0 : index
    %67 = vector.load %arg10[%c0_37, %c0_38, %c0_39] : memref<2x32x96xf32, #tpu.memory_space<vmem>>, vector<1x32x96xf32>
    %68 = vector.shape_cast %67 : vector<1x32x96xf32> to vector<32x96xf32>
    %69 = arith.truncf %66 : vector<5x32xf32> to vector<5x32xbf16>
    %70 = arith.truncf %68 : vector<32x96xf32> to vector<32x96xbf16>
    %cst_40 = arith.constant dense<0.000000e+00> : vector<5x96xf32>
    %71 = tpu.matmul %69, %70, %cst_40 {dimension_numbers = #tpu.dot_dimension_numbers<[1], [0], [0], [1], [0, 0, 1, 1], [], []>} : vector<5x32xbf16>, vector<32x96xbf16>, vector<5x96xf32> -> vector<5x96xf32>
    %c0_41 = arith.constant 0 : index
    %c0_42 = arith.constant 0 : index
    %c0_43 = arith.constant 0 : index
    %72 = vector.load %arg11[%c0_41, %c0_42, %c0_43] : memref<2x1x96xf32, #tpu.memory_space<vmem>>, vector<1x1x96xf32>
    %73 = vector.shape_cast %72 : vector<1x1x96xf32> to vector<1x96xf32>
    %74 = vector.broadcast %73 : vector<1x96xf32> to vector<5x96xf32>
    %75 = arith.addf %71, %74 : vector<5x96xf32>
    %c0_44 = arith.constant 0 : index
    %c0_45 = arith.constant 0 : index
    %c0_46 = arith.constant 0 : index
    %76 = vector.load %arg12[%c0_44, %c0_45, %c0_46] : memref<2x32x32xf32, #tpu.memory_space<vmem>>, vector<1x32x32xf32>
    %77 = vector.shape_cast %76 : vector<1x32x32xf32> to vector<32x32xf32>
    %cst_47 = arith.constant 0.000000e+00 : f32
    %78 = vector.broadcast %cst_47 : f32 to vector<5x32xf32>
    %79 = vector.extract_strided_slice %75 {offsets = [0, 0], sizes = [5, 8], strides = [1, 1]} : vector<5x96xf32> to vector<5x8xf32>
    %cst_48 = arith.constant 0.353553385 : f32
    %80 = vector.broadcast %cst_48 : f32 to vector<5x8xf32>
    %81 = arith.mulf %79, %80 : vector<5x8xf32>
    %82 = vector.extract_strided_slice %75 {offsets = [0, 32], sizes = [5, 8], strides = [1, 1]} : vector<5x96xf32> to vector<5x8xf32>
    %83 = vector.extract_strided_slice %75 {offsets = [0, 64], sizes = [5, 8], strides = [1, 1]} : vector<5x96xf32> to vector<5x8xf32>
    %84 = arith.truncf %81 : vector<5x8xf32> to vector<5x8xbf16>
    %85 = arith.truncf %82 : vector<5x8xf32> to vector<5x8xbf16>
    "tpu.trace_start"() <{level = 10 : i32, message = "qd,kd->qk"}> : () -> ()
    %cst_49 = arith.constant dense<0.000000e+00> : vector<5x5xf32>
    %86 = tpu.matmul %84, %85, %cst_49 {dimension_numbers = #tpu.dot_dimension_numbers<[1], [1], [0], [0], [0, 0, 1, 0], [], []>} : vector<5x8xbf16>, vector<5x8xbf16>, vector<5x5xf32> -> vector<5x5xf32>
    "tpu.trace_stop"() : () -> ()
    %cst_50 = arith.constant dense<0xFF800000> : vector<5xf32>
    %87 = vector.multi_reduction <maximumf>, %86, %cst_50 [1] : vector<5x5xf32> to vector<5xf32>
    %88 = vector.shape_cast %87 : vector<5xf32> to vector<5x1xf32>
    %89 = vector.broadcast %88 : vector<5x1xf32> to vector<5x5xf32>
    %90 = arith.subf %86, %89 : vector<5x5xf32>
    %91 = math.exp %90 : vector<5x5xf32>
    %cst_51 = arith.constant dense<0.000000e+00> : vector<5xf32>
    %92 = vector.multi_reduction <add>, %91, %cst_51 [1] : vector<5x5xf32> to vector<5xf32>
    %93 = vector.shape_cast %92 : vector<5xf32> to vector<5x1xf32>
    %94 = tpu.reciprocal %93 {approx = true} : vector<5x1xf32> -> vector<5x1xf32>
    %95 = vector.broadcast %94 : vector<5x1xf32> to vector<5x5xf32>
    %96 = arith.mulf %91, %95 : vector<5x5xf32>
    %97 = arith.truncf %96 : vector<5x5xf32> to vector<5x5xbf16>
    %98 = arith.truncf %83 : vector<5x8xf32> to vector<5x8xbf16>
    "tpu.trace_start"() <{level = 10 : i32, message = "qk,kd->qd"}> : () -> ()
    %cst_52 = arith.constant dense<0.000000e+00> : vector<5x8xf32>
    %99 = tpu.matmul %97, %98, %cst_52 {dimension_numbers = #tpu.dot_dimension_numbers<[1], [0], [0], [1], [0, 0, 1, 1], [], []>} : vector<5x5xbf16>, vector<5x8xbf16>, vector<5x8xf32> -> vector<5x8xf32>
    "tpu.trace_stop"() : () -> ()
    %100 = vector.extract_strided_slice %77 {offsets = [0, 0], sizes = [8, 32], strides = [1, 1]} : vector<32x32xf32> to vector<8x32xf32>
    %101 = arith.truncf %99 : vector<5x8xf32> to vector<5x8xbf16>
    %102 = arith.truncf %100 : vector<8x32xf32> to vector<8x32xbf16>
    %cst_53 = arith.constant dense<0.000000e+00> : vector<5x32xf32>
    %103 = tpu.matmul %101, %102, %cst_53 {dimension_numbers = #tpu.dot_dimension_numbers<[1], [0], [0], [1], [0, 0, 1, 1], [], []>} : vector<5x8xbf16>, vector<8x32xbf16>, vector<5x32xf32> -> vector<5x32xf32>
    %104 = arith.addf %78, %103 : vector<5x32xf32>
    %105 = vector.extract_strided_slice %75 {offsets = [0, 8], sizes = [5, 8], strides = [1, 1]} : vector<5x96xf32> to vector<5x8xf32>
    %cst_54 = arith.constant 0.353553385 : f32
    %106 = vector.broadcast %cst_54 : f32 to vector<5x8xf32>
    %107 = arith.mulf %105, %106 : vector<5x8xf32>
    %108 = vector.extract_strided_slice %75 {offsets = [0, 40], sizes = [5, 8], strides = [1, 1]} : vector<5x96xf32> to vector<5x8xf32>
    %109 = vector.extract_strided_slice %75 {offsets = [0, 72], sizes = [5, 8], strides = [1, 1]} : vector<5x96xf32> to vector<5x8xf32>
    %110 = arith.truncf %107 : vector<5x8xf32> to vector<5x8xbf16>
    %111 = arith.truncf %108 : vector<5x8xf32> to vector<5x8xbf16>
    "tpu.trace_start"() <{level = 10 : i32, message = "qd,kd->qk"}> : () -> ()
    %cst_55 = arith.constant dense<0.000000e+00> : vector<5x5xf32>
    %112 = tpu.matmul %110, %111, %cst_55 {dimension_numbers = #tpu.dot_dimension_numbers<[1], [1], [0], [0], [0, 0, 1, 0], [], []>} : vector<5x8xbf16>, vector<5x8xbf16>, vector<5x5xf32> -> vector<5x5xf32>
    "tpu.trace_stop"() : () -> ()
    %cst_56 = arith.constant dense<0xFF800000> : vector<5xf32>
    %113 = vector.multi_reduction <maximumf>, %112, %cst_56 [1] : vector<5x5xf32> to vector<5xf32>
    %114 = vector.shape_cast %113 : vector<5xf32> to vector<5x1xf32>
    %115 = vector.broadcast %114 : vector<5x1xf32> to vector<5x5xf32>
    %116 = arith.subf %112, %115 : vector<5x5xf32>
    %117 = math.exp %116 : vector<5x5xf32>
    %cst_57 = arith.constant dense<0.000000e+00> : vector<5xf32>
    %118 = vector.multi_reduction <add>, %117, %cst_57 [1] : vector<5x5xf32> to vector<5xf32>
    %119 = vector.shape_cast %118 : vector<5xf32> to vector<5x1xf32>
    %120 = tpu.reciprocal %119 {approx = true} : vector<5x1xf32> -> vector<5x1xf32>
    %121 = vector.broadcast %120 : vector<5x1xf32> to vector<5x5xf32>
    %122 = arith.mulf %117, %121 : vector<5x5xf32>
    %123 = arith.truncf %122 : vector<5x5xf32> to vector<5x5xbf16>
    %124 = arith.truncf %109 : vector<5x8xf32> to vector<5x8xbf16>
    "tpu.trace_start"() <{level = 10 : i32, message = "qk,kd->qd"}> : () -> ()
    %cst_58 = arith.constant dense<0.000000e+00> : vector<5x8xf32>
    %125 = tpu.matmul %123, %124, %cst_58 {dimension_numbers = #tpu.dot_dimension_numbers<[1], [0], [0], [1], [0, 0, 1, 1], [], []>} : vector<5x5xbf16>, vector<5x8xbf16>, vector<5x8xf32> -> vector<5x8xf32>
    "tpu.trace_stop"() : () -> ()
    %126 = vector.extract_strided_slice %77 {offsets = [8, 0], sizes = [8, 32], strides = [1, 1]} : vector<32x32xf32> to vector<8x32xf32>
    %127 = arith.truncf %125 : vector<5x8xf32> to vector<5x8xbf16>
    %128 = arith.truncf %126 : vector<8x32xf32> to vector<8x32xbf16>
    %cst_59 = arith.constant dense<0.000000e+00> : vector<5x32xf32>
    %129 = tpu.matmul %127, %128, %cst_59 {dimension_numbers = #tpu.dot_dimension_numbers<[1], [0], [0], [1], [0, 0, 1, 1], [], []>} : vector<5x8xbf16>, vector<8x32xbf16>, vector<5x32xf32> -> vector<5x32xf32>
    %130 = arith.addf %104, %129 : vector<5x32xf32>
    %131 = vector.extract_strided_slice %75 {offsets = [0, 16], sizes = [5, 8], strides = [1, 1]} : vector<5x96xf32> to vector<5x8xf32>
    %cst_60 = arith.constant 0.353553385 : f32
    %132 = vector.broadcast %cst_60 : f32 to vector<5x8xf32>
    %133 = arith.mulf %131, %132 : vector<5x8xf32>
    %134 = vector.extract_strided_slice %75 {offsets = [0, 48], sizes = [5, 8], strides = [1, 1]} : vector<5x96xf32> to vector<5x8xf32>
    %135 = vector.extract_strided_slice %75 {offsets = [0, 80], sizes = [5, 8], strides = [1, 1]} : vector<5x96xf32> to vector<5x8xf32>
    %136 = arith.truncf %133 : vector<5x8xf32> to vector<5x8xbf16>
    %137 = arith.truncf %134 : vector<5x8xf32> to vector<5x8xbf16>
    "tpu.trace_start"() <{level = 10 : i32, message = "qd,kd->qk"}> : () -> ()
    %cst_61 = arith.constant dense<0.000000e+00> : vector<5x5xf32>
    %138 = tpu.matmul %136, %137, %cst_61 {dimension_numbers = #tpu.dot_dimension_numbers<[1], [1], [0], [0], [0, 0, 1, 0], [], []>} : vector<5x8xbf16>, vector<5x8xbf16>, vector<5x5xf32> -> vector<5x5xf32>
    "tpu.trace_stop"() : () -> ()
    %cst_62 = arith.constant dense<0xFF800000> : vector<5xf32>
    %139 = vector.multi_reduction <maximumf>, %138, %cst_62 [1] : vector<5x5xf32> to vector<5xf32>
    %140 = vector.shape_cast %139 : vector<5xf32> to vector<5x1xf32>
    %141 = vector.broadcast %140 : vector<5x1xf32> to vector<5x5xf32>
    %142 = arith.subf %138, %141 : vector<5x5xf32>
    %143 = math.exp %142 : vector<5x5xf32>
    %cst_63 = arith.constant dense<0.000000e+00> : vector<5xf32>
    %144 = vector.multi_reduction <add>, %143, %cst_63 [1] : vector<5x5xf32> to vector<5xf32>
    %145 = vector.shape_cast %144 : vector<5xf32> to vector<5x1xf32>
    %146 = tpu.reciprocal %145 {approx = true} : vector<5x1xf32> -> vector<5x1xf32>
    %147 = vector.broadcast %146 : vector<5x1xf32> to vector<5x5xf32>
    %148 = arith.mulf %143, %147 : vector<5x5xf32>
    %149 = arith.truncf %148 : vector<5x5xf32> to vector<5x5xbf16>
    %150 = arith.truncf %135 : vector<5x8xf32> to vector<5x8xbf16>
    "tpu.trace_start"() <{level = 10 : i32, message = "qk,kd->qd"}> : () -> ()
    %cst_64 = arith.constant dense<0.000000e+00> : vector<5x8xf32>
    %151 = tpu.matmul %149, %150, %cst_64 {dimension_numbers = #tpu.dot_dimension_numbers<[1], [0], [0], [1], [0, 0, 1, 1], [], []>} : vector<5x5xbf16>, vector<5x8xbf16>, vector<5x8xf32> -> vector<5x8xf32>
    "tpu.trace_stop"() : () -> ()
    %152 = vector.extract_strided_slice %77 {offsets = [16, 0], sizes = [8, 32], strides = [1, 1]} : vector<32x32xf32> to vector<8x32xf32>
    %153 = arith.truncf %151 : vector<5x8xf32> to vector<5x8xbf16>
    %154 = arith.truncf %152 : vector<8x32xf32> to vector<8x32xbf16>
    %cst_65 = arith.constant dense<0.000000e+00> : vector<5x32xf32>
    %155 = tpu.matmul %153, %154, %cst_65 {dimension_numbers = #tpu.dot_dimension_numbers<[1], [0], [0], [1], [0, 0, 1, 1], [], []>} : vector<5x8xbf16>, vector<8x32xbf16>, vector<5x32xf32> -> vector<5x32xf32>
    %156 = arith.addf %130, %155 : vector<5x32xf32>
    %157 = vector.extract_strided_slice %75 {offsets = [0, 24], sizes = [5, 8], strides = [1, 1]} : vector<5x96xf32> to vector<5x8xf32>
    %cst_66 = arith.constant 0.353553385 : f32
    %158 = vector.broadcast %cst_66 : f32 to vector<5x8xf32>
    %159 = arith.mulf %157, %158 : vector<5x8xf32>
    %160 = vector.extract_strided_slice %75 {offsets = [0, 56], sizes = [5, 8], strides = [1, 1]} : vector<5x96xf32> to vector<5x8xf32>
    %161 = vector.extract_strided_slice %75 {offsets = [0, 88], sizes = [5, 8], strides = [1, 1]} : vector<5x96xf32> to vector<5x8xf32>
    %162 = arith.truncf %159 : vector<5x8xf32> to vector<5x8xbf16>
    %163 = arith.truncf %160 : vector<5x8xf32> to vector<5x8xbf16>
    "tpu.trace_start"() <{level = 10 : i32, message = "qd,kd->qk"}> : () -> ()
    %cst_67 = arith.constant dense<0.000000e+00> : vector<5x5xf32>
    %164 = tpu.matmul %162, %163, %cst_67 {dimension_numbers = #tpu.dot_dimension_numbers<[1], [1], [0], [0], [0, 0, 1, 0], [], []>} : vector<5x8xbf16>, vector<5x8xbf16>, vector<5x5xf32> -> vector<5x5xf32>
    "tpu.trace_stop"() : () -> ()
    %cst_68 = arith.constant dense<0xFF800000> : vector<5xf32>
    %165 = vector.multi_reduction <maximumf>, %164, %cst_68 [1] : vector<5x5xf32> to vector<5xf32>
    %166 = vector.shape_cast %165 : vector<5xf32> to vector<5x1xf32>
    %167 = vector.broadcast %166 : vector<5x1xf32> to vector<5x5xf32>
    %168 = arith.subf %164, %167 : vector<5x5xf32>
    %169 = math.exp %168 : vector<5x5xf32>
    %cst_69 = arith.constant dense<0.000000e+00> : vector<5xf32>
    %170 = vector.multi_reduction <add>, %169, %cst_69 [1] : vector<5x5xf32> to vector<5xf32>
    %171 = vector.shape_cast %170 : vector<5xf32> to vector<5x1xf32>
    %172 = tpu.reciprocal %171 {approx = true} : vector<5x1xf32> -> vector<5x1xf32>
    %173 = vector.broadcast %172 : vector<5x1xf32> to vector<5x5xf32>
    %174 = arith.mulf %169, %173 : vector<5x5xf32>
    %175 = arith.truncf %174 : vector<5x5xf32> to vector<5x5xbf16>
    %176 = arith.truncf %161 : vector<5x8xf32> to vector<5x8xbf16>
    "tpu.trace_start"() <{level = 10 : i32, message = "qk,kd->qd"}> : () -> ()
    %cst_70 = arith.constant dense<0.000000e+00> : vector<5x8xf32>
    %177 = tpu.matmul %175, %176, %cst_70 {dimension_numbers = #tpu.dot_dimension_numbers<[1], [0], [0], [1], [0, 0, 1, 1], [], []>} : vector<5x5xbf16>, vector<5x8xbf16>, vector<5x8xf32> -> vector<5x8xf32>
    "tpu.trace_stop"() : () -> ()
    %178 = vector.extract_strided_slice %77 {offsets = [24, 0], sizes = [8, 32], strides = [1, 1]} : vector<32x32xf32> to vector<8x32xf32>
    %179 = arith.truncf %177 : vector<5x8xf32> to vector<5x8xbf16>
    %180 = arith.truncf %178 : vector<8x32xf32> to vector<8x32xbf16>
    %cst_71 = arith.constant dense<0.000000e+00> : vector<5x32xf32>
    %181 = tpu.matmul %179, %180, %cst_71 {dimension_numbers = #tpu.dot_dimension_numbers<[1], [0], [0], [1], [0, 0, 1, 1], [], []>} : vector<5x8xbf16>, vector<8x32xbf16>, vector<5x32xf32> -> vector<5x32xf32>
    %182 = arith.addf %156, %181 : vector<5x32xf32>
    %183 = arith.addf %40, %182 : vector<5x32xf32>
    %c0_72 = arith.constant 0 : index
    %c0_73 = arith.constant 0 : index
    %c0_74 = arith.constant 0 : index
    %184 = vector.load %arg13[%c0_72, %c0_73, %c0_74] : memref<2x1x32xf32, #tpu.memory_space<vmem>>, vector<1x1x32xf32>
    %185 = vector.shape_cast %184 : vector<1x1x32xf32> to vector<1x32xf32>
    %186 = vector.broadcast %185 : vector<1x32xf32> to vector<5x32xf32>
    %187 = arith.addf %183, %186 : vector<5x32xf32>
    %c0_75 = arith.constant 0 : index
    %c0_76 = arith.constant 0 : index
    %c0_77 = arith.constant 0 : index
    %188 = vector.load %arg14[%c0_75, %c0_76, %c0_77] : memref<2x1x32xf32, #tpu.memory_space<vmem>>, vector<1x1x32xf32>
    %189 = vector.shape_cast %188 : vector<1x1x32xf32> to vector<1x32xf32>
    %c0_78 = arith.constant 0 : index
    %c0_79 = arith.constant 0 : index
    %c0_80 = arith.constant 0 : index
    %190 = vector.load %arg15[%c0_78, %c0_79, %c0_80] : memref<2x1x32xf32, #tpu.memory_space<vmem>>, vector<1x1x32xf32>
    %191 = vector.shape_cast %190 : vector<1x1x32xf32> to vector<1x32xf32>
    %cst_81 = arith.constant dense<0.000000e+00> : vector<5xf32>
    %192 = vector.multi_reduction <add>, %187, %cst_81 [1] : vector<5x32xf32> to vector<5xf32>
    %193 = vector.shape_cast %192 : vector<5xf32> to vector<5x1xf32>
    %cst_82 = arith.constant 3.200000e+01 : f32
    %194 = vector.broadcast %cst_82 : f32 to vector<5x1xf32>
    %195 = arith.divf %193, %194 : vector<5x1xf32>
    %196 = vector.broadcast %195 : vector<5x1xf32> to vector<5x32xf32>
    %197 = arith.subf %187, %196 : vector<5x32xf32>
    %198 = arith.mulf %197, %197 : vector<5x32xf32>
    %cst_83 = arith.constant dense<0.000000e+00> : vector<5xf32>
    %199 = vector.multi_reduction <add>, %198, %cst_83 [1] : vector<5x32xf32> to vector<5xf32>
    %200 = vector.shape_cast %199 : vector<5xf32> to vector<5x1xf32>
    %cst_84 = arith.constant 3.200000e+01 : f32
    %201 = vector.broadcast %cst_84 : f32 to vector<5x1xf32>
    %202 = arith.divf %200, %201 : vector<5x1xf32>
    %203 = vector.broadcast %195 : vector<5x1xf32> to vector<5x32xf32>
    %204 = arith.subf %187, %203 : vector<5x32xf32>
    %cst_85 = arith.constant 9.99999974E-6 : f32
    %205 = vector.broadcast %cst_85 : f32 to vector<5x1xf32>
    %206 = arith.addf %202, %205 : vector<5x1xf32>
    %207 = math.rsqrt %206 : vector<5x1xf32>
    %208 = vector.broadcast %207 : vector<5x1xf32> to vector<5x32xf32>
    %209 = arith.mulf %204, %208 : vector<5x32xf32>
    %210 = vector.broadcast %189 : vector<1x32xf32> to vector<5x32xf32>
    %211 = arith.mulf %209, %210 : vector<5x32xf32>
    %212 = vector.broadcast %191 : vector<1x32xf32> to vector<5x32xf32>
    %213 = arith.addf %211, %212 : vector<5x32xf32>
    %c0_86 = arith.constant 0 : index
    %c0_87 = arith.constant 0 : index
    %c0_88 = arith.constant 0 : index
    %214 = vector.load %arg16[%c0_86, %c0_87, %c0_88] : memref<2x32x128xf32, #tpu.memory_space<vmem>>, vector<1x32x128xf32>
    %215 = vector.shape_cast %214 : vector<1x32x128xf32> to vector<32x128xf32>
    %216 = arith.truncf %213 : vector<5x32xf32> to vector<5x32xbf16>
    %217 = arith.truncf %215 : vector<32x128xf32> to vector<32x128xbf16>
    %cst_89 = arith.constant dense<0.000000e+00> : vector<5x128xf32>
    %218 = tpu.matmul %216, %217, %cst_89 {dimension_numbers = #tpu.dot_dimension_numbers<[1], [0], [0], [1], [0, 0, 1, 1], [], []>} : vector<5x32xbf16>, vector<32x128xbf16>, vector<5x128xf32> -> vector<5x128xf32>
    %c0_90 = arith.constant 0 : index
    %c0_91 = arith.constant 0 : index
    %c0_92 = arith.constant 0 : index
    %219 = vector.load %arg17[%c0_90, %c0_91, %c0_92] : memref<2x1x128xf32, #tpu.memory_space<vmem>>, vector<1x1x128xf32>
    %220 = vector.shape_cast %219 : vector<1x1x128xf32> to vector<1x128xf32>
    %221 = vector.broadcast %220 : vector<1x128xf32> to vector<5x128xf32>
    %222 = arith.addf %218, %221 : vector<5x128xf32>
    %cst_93 = arith.constant 1.702000e+00 : f32
    %223 = vector.broadcast %cst_93 : f32 to vector<5x128xf32>
    %224 = arith.mulf %223, %222 : vector<5x128xf32>
    %225 = arith.negf %224 : vector<5x128xf32>
    %226 = math.exp %225 : vector<5x128xf32>
    %cst_94 = arith.constant 1.000000e+00 : f32
    %227 = vector.broadcast %cst_94 : f32 to vector<5x128xf32>
    %228 = arith.addf %227, %226 : vector<5x128xf32>
    %229 = arith.divf %227, %228 : vector<5x128xf32>
    %230 = arith.mulf %222, %229 : vector<5x128xf32>
    %c0_95 = arith.constant 0 : index
    %c0_96 = arith.constant 0 : index
    %c0_97 = arith.constant 0 : index
    %231 = vector.load %arg18[%c0_95, %c0_96, %c0_97] : memref<2x128x32xf32, #tpu.memory_space<vmem>>, vector<1x128x32xf32>
    %232 = vector.shape_cast %231 : vector<1x128x32xf32> to vector<128x32xf32>
    %233 = arith.truncf %230 : vector<5x128xf32> to vector<5x128xbf16>
    %234 = arith.truncf %232 : vector<128x32xf32> to vector<128x32xbf16>
    %cst_98 = arith.constant dense<0.000000e+00> : vector<5x32xf32>
    %235 = tpu.matmul %233, %234, %cst_98 {dimension_numbers = #tpu.dot_dimension_numbers<[1], [0], [0], [1], [0, 0, 1, 1], [], []>} : vector<5x128xbf16>, vector<128x32xbf16>, vector<5x32xf32> -> vector<5x32xf32>
    %c0_99 = arith.constant 0 : index
    %c0_100 = arith.constant 0 : index
    %c0_101 = arith.constant 0 : index
    %236 = vector.load %arg19[%c0_99, %c0_100, %c0_101] : memref<2x1x32xf32, #tpu.memory_space<vmem>>, vector<1x1x32xf32>
    %237 = vector.shape_cast %236 : vector<1x1x32xf32> to vector<1x32xf32>
    %238 = vector.broadcast %237 : vector<1x32xf32> to vector<5x32xf32>
    %239 = arith.addf %235, %238 : vector<5x32xf32>
    %240 = arith.addf %187, %239 : vector<5x32xf32>
    %c1_102 = arith.constant 1 : index
    %c0_103 = arith.constant 0 : index
    %c0_104 = arith.constant 0 : index
    %241 = vector.load %arg8[%c1_102, %c0_103, %c0_104] : memref<2x1x32xf32, #tpu.memory_space<vmem>>, vector<1x1x32xf32>
    %242 = vector.shape_cast %241 : vector<1x1x32xf32> to vector<1x32xf32>
    %c1_105 = arith.constant 1 : index
    %c0_106 = arith.constant 0 : index
    %c0_107 = arith.constant 0 : index
    %243 = vector.load %arg9[%c1_105, %c0_106, %c0_107] : memref<2x1x32xf32, #tpu.memory_space<vmem>>, vector<1x1x32xf32>
    %244 = vector.shape_cast %243 : vector<1x1x32xf32> to vector<1x32xf32>
    %cst_108 = arith.constant dense<0.000000e+00> : vector<5xf32>
    %245 = vector.multi_reduction <add>, %240, %cst_108 [1] : vector<5x32xf32> to vector<5xf32>
    %246 = vector.shape_cast %245 : vector<5xf32> to vector<5x1xf32>
    %cst_109 = arith.constant 3.200000e+01 : f32
    %247 = vector.broadcast %cst_109 : f32 to vector<5x1xf32>
    %248 = arith.divf %246, %247 : vector<5x1xf32>
    %249 = vector.broadcast %248 : vector<5x1xf32> to vector<5x32xf32>
    %250 = arith.subf %240, %249 : vector<5x32xf32>
    %251 = arith.mulf %250, %250 : vector<5x32xf32>
    %cst_110 = arith.constant dense<0.000000e+00> : vector<5xf32>
    %252 = vector.multi_reduction <add>, %251, %cst_110 [1] : vector<5x32xf32> to vector<5xf32>
    %253 = vector.shape_cast %252 : vector<5xf32> to vector<5x1xf32>
    %cst_111 = arith.constant 3.200000e+01 : f32
    %254 = vector.broadcast %cst_111 : f32 to vector<5x1xf32>
    %255 = arith.divf %253, %254 : vector<5x1xf32>
    %256 = vector.broadcast %248 : vector<5x1xf32> to vector<5x32xf32>
    %257 = arith.subf %240, %256 : vector<5x32xf32>
    %cst_112 = arith.constant 9.99999974E-6 : f32
    %258 = vector.broadcast %cst_112 : f32 to vector<5x1xf32>
    %259 = arith.addf %255, %258 : vector<5x1xf32>
    %260 = math.rsqrt %259 : vector<5x1xf32>
    %261 = vector.broadcast %260 : vector<5x1xf32> to vector<5x32xf32>
    %262 = arith.mulf %257, %261 : vector<5x32xf32>
    %263 = vector.broadcast %242 : vector<1x32xf32> to vector<5x32xf32>
    %264 = arith.mulf %262, %263 : vector<5x32xf32>
    %265 = vector.broadcast %244 : vector<1x32xf32> to vector<5x32xf32>
    %266 = arith.addf %264, %265 : vector<5x32xf32>
    %c1_113 = arith.constant 1 : index
    %c0_114 = arith.constant 0 : index
    %c0_115 = arith.constant 0 : index
    %267 = vector.load %arg10[%c1_113, %c0_114, %c0_115] : memref<2x32x96xf32, #tpu.memory_space<vmem>>, vector<1x32x96xf32>
    %268 = vector.shape_cast %267 : vector<1x32x96xf32> to vector<32x96xf32>
    %269 = arith.truncf %266 : vector<5x32xf32> to vector<5x32xbf16>
    %270 = arith.truncf %268 : vector<32x96xf32> to vector<32x96xbf16>
    %cst_116 = arith.constant dense<0.000000e+00> : vector<5x96xf32>
    %271 = tpu.matmul %269, %270, %cst_116 {dimension_numbers = #tpu.dot_dimension_numbers<[1], [0], [0], [1], [0, 0, 1, 1], [], []>} : vector<5x32xbf16>, vector<32x96xbf16>, vector<5x96xf32> -> vector<5x96xf32>
    %c1_117 = arith.constant 1 : index
    %c0_118 = arith.constant 0 : index
    %c0_119 = arith.constant 0 : index
    %272 = vector.load %arg11[%c1_117, %c0_118, %c0_119] : memref<2x1x96xf32, #tpu.memory_space<vmem>>, vector<1x1x96xf32>
    %273 = vector.shape_cast %272 : vector<1x1x96xf32> to vector<1x96xf32>
    %274 = vector.broadcast %273 : vector<1x96xf32> to vector<5x96xf32>
    %275 = arith.addf %271, %274 : vector<5x96xf32>
    %c1_120 = arith.constant 1 : index
    %c0_121 = arith.constant 0 : index
    %c0_122 = arith.constant 0 : index
    %276 = vector.load %arg12[%c1_120, %c0_121, %c0_122] : memref<2x32x32xf32, #tpu.memory_space<vmem>>, vector<1x32x32xf32>
    %277 = vector.shape_cast %276 : vector<1x32x32xf32> to vector<32x32xf32>
    %cst_123 = arith.constant 0.000000e+00 : f32
    %278 = vector.broadcast %cst_123 : f32 to vector<5x32xf32>
    %279 = vector.extract_strided_slice %275 {offsets = [0, 0], sizes = [5, 8], strides = [1, 1]} : vector<5x96xf32> to vector<5x8xf32>
    %cst_124 = arith.constant 0.353553385 : f32
    %280 = vector.broadcast %cst_124 : f32 to vector<5x8xf32>
    %281 = arith.mulf %279, %280 : vector<5x8xf32>
    %282 = vector.extract_strided_slice %275 {offsets = [0, 32], sizes = [5, 8], strides = [1, 1]} : vector<5x96xf32> to vector<5x8xf32>
    %283 = vector.extract_strided_slice %275 {offsets = [0, 64], sizes = [5, 8], strides = [1, 1]} : vector<5x96xf32> to vector<5x8xf32>
    %284 = arith.truncf %281 : vector<5x8xf32> to vector<5x8xbf16>
    %285 = arith.truncf %282 : vector<5x8xf32> to vector<5x8xbf16>
    "tpu.trace_start"() <{level = 10 : i32, message = "qd,kd->qk"}> : () -> ()
    %cst_125 = arith.constant dense<0.000000e+00> : vector<5x5xf32>
    %286 = tpu.matmul %284, %285, %cst_125 {dimension_numbers = #tpu.dot_dimension_numbers<[1], [1], [0], [0], [0, 0, 1, 0], [], []>} : vector<5x8xbf16>, vector<5x8xbf16>, vector<5x5xf32> -> vector<5x5xf32>
    "tpu.trace_stop"() : () -> ()
    %cst_126 = arith.constant dense<0xFF800000> : vector<5xf32>
    %287 = vector.multi_reduction <maximumf>, %286, %cst_126 [1] : vector<5x5xf32> to vector<5xf32>
    %288 = vector.shape_cast %287 : vector<5xf32> to vector<5x1xf32>
    %289 = vector.broadcast %288 : vector<5x1xf32> to vector<5x5xf32>
    %290 = arith.subf %286, %289 : vector<5x5xf32>
    %291 = math.exp %290 : vector<5x5xf32>
    %cst_127 = arith.constant dense<0.000000e+00> : vector<5xf32>
    %292 = vector.multi_reduction <add>, %291, %cst_127 [1] : vector<5x5xf32> to vector<5xf32>
    %293 = vector.shape_cast %292 : vector<5xf32> to vector<5x1xf32>
    %294 = tpu.reciprocal %293 {approx = true} : vector<5x1xf32> -> vector<5x1xf32>
    %295 = vector.broadcast %294 : vector<5x1xf32> to vector<5x5xf32>
    %296 = arith.mulf %291, %295 : vector<5x5xf32>
    %297 = arith.truncf %296 : vector<5x5xf32> to vector<5x5xbf16>
    %298 = arith.truncf %283 : vector<5x8xf32> to vector<5x8xbf16>
    "tpu.trace_start"() <{level = 10 : i32, message = "qk,kd->qd"}> : () -> ()
    %cst_128 = arith.constant dense<0.000000e+00> : vector<5x8xf32>
    %299 = tpu.matmul %297, %298, %cst_128 {dimension_numbers = #tpu.dot_dimension_numbers<[1], [0], [0], [1], [0, 0, 1, 1], [], []>} : vector<5x5xbf16>, vector<5x8xbf16>, vector<5x8xf32> -> vector<5x8xf32>
    "tpu.trace_stop"() : () -> ()
    %300 = vector.extract_strided_slice %277 {offsets = [0, 0], sizes = [8, 32], strides = [1, 1]} : vector<32x32xf32> to vector<8x32xf32>
    %301 = arith.truncf %299 : vector<5x8xf32> to vector<5x8xbf16>
    %302 = arith.truncf %300 : vector<8x32xf32> to vector<8x32xbf16>
    %cst_129 = arith.constant dense<0.000000e+00> : vector<5x32xf32>
    %303 = tpu.matmul %301, %302, %cst_129 {dimension_numbers = #tpu.dot_dimension_numbers<[1], [0], [0], [1], [0, 0, 1, 1], [], []>} : vector<5x8xbf16>, vector<8x32xbf16>, vector<5x32xf32> -> vector<5x32xf32>
    %304 = arith.addf %278, %303 : vector<5x32xf32>
    %305 = vector.extract_strided_slice %275 {offsets = [0, 8], sizes = [5, 8], strides = [1, 1]} : vector<5x96xf32> to vector<5x8xf32>
    %cst_130 = arith.constant 0.353553385 : f32
    %306 = vector.broadcast %cst_130 : f32 to vector<5x8xf32>
    %307 = arith.mulf %305, %306 : vector<5x8xf32>
    %308 = vector.extract_strided_slice %275 {offsets = [0, 40], sizes = [5, 8], strides = [1, 1]} : vector<5x96xf32> to vector<5x8xf32>
    %309 = vector.extract_strided_slice %275 {offsets = [0, 72], sizes = [5, 8], strides = [1, 1]} : vector<5x96xf32> to vector<5x8xf32>
    %310 = arith.truncf %307 : vector<5x8xf32> to vector<5x8xbf16>
    %311 = arith.truncf %308 : vector<5x8xf32> to vector<5x8xbf16>
    "tpu.trace_start"() <{level = 10 : i32, message = "qd,kd->qk"}> : () -> ()
    %cst_131 = arith.constant dense<0.000000e+00> : vector<5x5xf32>
    %312 = tpu.matmul %310, %311, %cst_131 {dimension_numbers = #tpu.dot_dimension_numbers<[1], [1], [0], [0], [0, 0, 1, 0], [], []>} : vector<5x8xbf16>, vector<5x8xbf16>, vector<5x5xf32> -> vector<5x5xf32>
    "tpu.trace_stop"() : () -> ()
    %cst_132 = arith.constant dense<0xFF800000> : vector<5xf32>
    %313 = vector.multi_reduction <maximumf>, %312, %cst_132 [1] : vector<5x5xf32> to vector<5xf32>
    %314 = vector.shape_cast %313 : vector<5xf32> to vector<5x1xf32>
    %315 = vector.broadcast %314 : vector<5x1xf32> to vector<5x5xf32>
    %316 = arith.subf %312, %315 : vector<5x5xf32>
    %317 = math.exp %316 : vector<5x5xf32>
    %cst_133 = arith.constant dense<0.000000e+00> : vector<5xf32>
    %318 = vector.multi_reduction <add>, %317, %cst_133 [1] : vector<5x5xf32> to vector<5xf32>
    %319 = vector.shape_cast %318 : vector<5xf32> to vector<5x1xf32>
    %320 = tpu.reciprocal %319 {approx = true} : vector<5x1xf32> -> vector<5x1xf32>
    %321 = vector.broadcast %320 : vector<5x1xf32> to vector<5x5xf32>
    %322 = arith.mulf %317, %321 : vector<5x5xf32>
    %323 = arith.truncf %322 : vector<5x5xf32> to vector<5x5xbf16>
    %324 = arith.truncf %309 : vector<5x8xf32> to vector<5x8xbf16>
    "tpu.trace_start"() <{level = 10 : i32, message = "qk,kd->qd"}> : () -> ()
    %cst_134 = arith.constant dense<0.000000e+00> : vector<5x8xf32>
    %325 = tpu.matmul %323, %324, %cst_134 {dimension_numbers = #tpu.dot_dimension_numbers<[1], [0], [0], [1], [0, 0, 1, 1], [], []>} : vector<5x5xbf16>, vector<5x8xbf16>, vector<5x8xf32> -> vector<5x8xf32>
    "tpu.trace_stop"() : () -> ()
    %326 = vector.extract_strided_slice %277 {offsets = [8, 0], sizes = [8, 32], strides = [1, 1]} : vector<32x32xf32> to vector<8x32xf32>
    %327 = arith.truncf %325 : vector<5x8xf32> to vector<5x8xbf16>
    %328 = arith.truncf %326 : vector<8x32xf32> to vector<8x32xbf16>
    %cst_135 = arith.constant dense<0.000000e+00> : vector<5x32xf32>
    %329 = tpu.matmul %327, %328, %cst_135 {dimension_numbers = #tpu.dot_dimension_numbers<[1], [0], [0], [1], [0, 0, 1, 1], [], []>} : vector<5x8xbf16>, vector<8x32xbf16>, vector<5x32xf32> -> vector<5x32xf32>
    %330 = arith.addf %304, %329 : vector<5x32xf32>
    %331 = vector.extract_strided_slice %275 {offsets = [0, 16], sizes = [5, 8], strides = [1, 1]} : vector<5x96xf32> to vector<5x8xf32>
    %cst_136 = arith.constant 0.353553385 : f32
    %332 = vector.broadcast %cst_136 : f32 to vector<5x8xf32>
    %333 = arith.mulf %331, %332 : vector<5x8xf32>
    %334 = vector.extract_strided_slice %275 {offsets = [0, 48], sizes = [5, 8], strides = [1, 1]} : vector<5x96xf32> to vector<5x8xf32>
    %335 = vector.extract_strided_slice %275 {offsets = [0, 80], sizes = [5, 8], strides = [1, 1]} : vector<5x96xf32> to vector<5x8xf32>
    %336 = arith.truncf %333 : vector<5x8xf32> to vector<5x8xbf16>
    %337 = arith.truncf %334 : vector<5x8xf32> to vector<5x8xbf16>
    "tpu.trace_start"() <{level = 10 : i32, message = "qd,kd->qk"}> : () -> ()
    %cst_137 = arith.constant dense<0.000000e+00> : vector<5x5xf32>
    %338 = tpu.matmul %336, %337, %cst_137 {dimension_numbers = #tpu.dot_dimension_numbers<[1], [1], [0], [0], [0, 0, 1, 0], [], []>} : vector<5x8xbf16>, vector<5x8xbf16>, vector<5x5xf32> -> vector<5x5xf32>
    "tpu.trace_stop"() : () -> ()
    %cst_138 = arith.constant dense<0xFF800000> : vector<5xf32>
    %339 = vector.multi_reduction <maximumf>, %338, %cst_138 [1] : vector<5x5xf32> to vector<5xf32>
    %340 = vector.shape_cast %339 : vector<5xf32> to vector<5x1xf32>
    %341 = vector.broadcast %340 : vector<5x1xf32> to vector<5x5xf32>
    %342 = arith.subf %338, %341 : vector<5x5xf32>
    %343 = math.exp %342 : vector<5x5xf32>
    %cst_139 = arith.constant dense<0.000000e+00> : vector<5xf32>
    %344 = vector.multi_reduction <add>, %343, %cst_139 [1] : vector<5x5xf32> to vector<5xf32>
    %345 = vector.shape_cast %344 : vector<5xf32> to vector<5x1xf32>
    %346 = tpu.reciprocal %345 {approx = true} : vector<5x1xf32> -> vector<5x1xf32>
    %347 = vector.broadcast %346 : vector<5x1xf32> to vector<5x5xf32>
    %348 = arith.mulf %343, %347 : vector<5x5xf32>
    %349 = arith.truncf %348 : vector<5x5xf32> to vector<5x5xbf16>
    %350 = arith.truncf %335 : vector<5x8xf32> to vector<5x8xbf16>
    "tpu.trace_start"() <{level = 10 : i32, message = "qk,kd->qd"}> : () -> ()
    %cst_140 = arith.constant dense<0.000000e+00> : vector<5x8xf32>
    %351 = tpu.matmul %349, %350, %cst_140 {dimension_numbers = #tpu.dot_dimension_numbers<[1], [0], [0], [1], [0, 0, 1, 1], [], []>} : vector<5x5xbf16>, vector<5x8xbf16>, vector<5x8xf32> -> vector<5x8xf32>
    "tpu.trace_stop"() : () -> ()
    %352 = vector.extract_strided_slice %277 {offsets = [16, 0], sizes = [8, 32], strides = [1, 1]} : vector<32x32xf32> to vector<8x32xf32>
    %353 = arith.truncf %351 : vector<5x8xf32> to vector<5x8xbf16>
    %354 = arith.truncf %352 : vector<8x32xf32> to vector<8x32xbf16>
    %cst_141 = arith.constant dense<0.000000e+00> : vector<5x32xf32>
    %355 = tpu.matmul %353, %354, %cst_141 {dimension_numbers = #tpu.dot_dimension_numbers<[1], [0], [0], [1], [0, 0, 1, 1], [], []>} : vector<5x8xbf16>, vector<8x32xbf16>, vector<5x32xf32> -> vector<5x32xf32>
    %356 = arith.addf %330, %355 : vector<5x32xf32>
    %357 = vector.extract_strided_slice %275 {offsets = [0, 24], sizes = [5, 8], strides = [1, 1]} : vector<5x96xf32> to vector<5x8xf32>
    %cst_142 = arith.constant 0.353553385 : f32
    %358 = vector.broadcast %cst_142 : f32 to vector<5x8xf32>
    %359 = arith.mulf %357, %358 : vector<5x8xf32>
    %360 = vector.extract_strided_slice %275 {offsets = [0, 56], sizes = [5, 8], strides = [1, 1]} : vector<5x96xf32> to vector<5x8xf32>
    %361 = vector.extract_strided_slice %275 {offsets = [0, 88], sizes = [5, 8], strides = [1, 1]} : vector<5x96xf32> to vector<5x8xf32>
    %362 = arith.truncf %359 : vector<5x8xf32> to vector<5x8xbf16>
    %363 = arith.truncf %360 : vector<5x8xf32> to vector<5x8xbf16>
    "tpu.trace_start"() <{level = 10 : i32, message = "qd,kd->qk"}> : () -> ()
    %cst_143 = arith.constant dense<0.000000e+00> : vector<5x5xf32>
    %364 = tpu.matmul %362, %363, %cst_143 {dimension_numbers = #tpu.dot_dimension_numbers<[1], [1], [0], [0], [0, 0, 1, 0], [], []>} : vector<5x8xbf16>, vector<5x8xbf16>, vector<5x5xf32> -> vector<5x5xf32>
    "tpu.trace_stop"() : () -> ()
    %cst_144 = arith.constant dense<0xFF800000> : vector<5xf32>
    %365 = vector.multi_reduction <maximumf>, %364, %cst_144 [1] : vector<5x5xf32> to vector<5xf32>
    %366 = vector.shape_cast %365 : vector<5xf32> to vector<5x1xf32>
    %367 = vector.broadcast %366 : vector<5x1xf32> to vector<5x5xf32>
    %368 = arith.subf %364, %367 : vector<5x5xf32>
    %369 = math.exp %368 : vector<5x5xf32>
    %cst_145 = arith.constant dense<0.000000e+00> : vector<5xf32>
    %370 = vector.multi_reduction <add>, %369, %cst_145 [1] : vector<5x5xf32> to vector<5xf32>
    %371 = vector.shape_cast %370 : vector<5xf32> to vector<5x1xf32>
    %372 = tpu.reciprocal %371 {approx = true} : vector<5x1xf32> -> vector<5x1xf32>
    %373 = vector.broadcast %372 : vector<5x1xf32> to vector<5x5xf32>
    %374 = arith.mulf %369, %373 : vector<5x5xf32>
    %375 = arith.truncf %374 : vector<5x5xf32> to vector<5x5xbf16>
    %376 = arith.truncf %361 : vector<5x8xf32> to vector<5x8xbf16>
    "tpu.trace_start"() <{level = 10 : i32, message = "qk,kd->qd"}> : () -> ()
    %cst_146 = arith.constant dense<0.000000e+00> : vector<5x8xf32>
    %377 = tpu.matmul %375, %376, %cst_146 {dimension_numbers = #tpu.dot_dimension_numbers<[1], [0], [0], [1], [0, 0, 1, 1], [], []>} : vector<5x5xbf16>, vector<5x8xbf16>, vector<5x8xf32> -> vector<5x8xf32>
    "tpu.trace_stop"() : () -> ()
    %378 = vector.extract_strided_slice %277 {offsets = [24, 0], sizes = [8, 32], strides = [1, 1]} : vector<32x32xf32> to vector<8x32xf32>
    %379 = arith.truncf %377 : vector<5x8xf32> to vector<5x8xbf16>
    %380 = arith.truncf %378 : vector<8x32xf32> to vector<8x32xbf16>
    %cst_147 = arith.constant dense<0.000000e+00> : vector<5x32xf32>
    %381 = tpu.matmul %379, %380, %cst_147 {dimension_numbers = #tpu.dot_dimension_numbers<[1], [0], [0], [1], [0, 0, 1, 1], [], []>} : vector<5x8xbf16>, vector<8x32xbf16>, vector<5x32xf32> -> vector<5x32xf32>
    %382 = arith.addf %356, %381 : vector<5x32xf32>
    %383 = arith.addf %240, %382 : vector<5x32xf32>
    %c1_148 = arith.constant 1 : index
    %c0_149 = arith.constant 0 : index
    %c0_150 = arith.constant 0 : index
    %384 = vector.load %arg13[%c1_148, %c0_149, %c0_150] : memref<2x1x32xf32, #tpu.memory_space<vmem>>, vector<1x1x32xf32>
    %385 = vector.shape_cast %384 : vector<1x1x32xf32> to vector<1x32xf32>
    %386 = vector.broadcast %385 : vector<1x32xf32> to vector<5x32xf32>
    %387 = arith.addf %383, %386 : vector<5x32xf32>
    %c1_151 = arith.constant 1 : index
    %c0_152 = arith.constant 0 : index
    %c0_153 = arith.constant 0 : index
    %388 = vector.load %arg14[%c1_151, %c0_152, %c0_153] : memref<2x1x32xf32, #tpu.memory_space<vmem>>, vector<1x1x32xf32>
    %389 = vector.shape_cast %388 : vector<1x1x32xf32> to vector<1x32xf32>
    %c1_154 = arith.constant 1 : index
    %c0_155 = arith.constant 0 : index
    %c0_156 = arith.constant 0 : index
    %390 = vector.load %arg15[%c1_154, %c0_155, %c0_156] : memref<2x1x32xf32, #tpu.memory_space<vmem>>, vector<1x1x32xf32>
    %391 = vector.shape_cast %390 : vector<1x1x32xf32> to vector<1x32xf32>
    %cst_157 = arith.constant dense<0.000000e+00> : vector<5xf32>
    %392 = vector.multi_reduction <add>, %387, %cst_157 [1] : vector<5x32xf32> to vector<5xf32>
    %393 = vector.shape_cast %392 : vector<5xf32> to vector<5x1xf32>
    %cst_158 = arith.constant 3.200000e+01 : f32
    %394 = vector.broadcast %cst_158 : f32 to vector<5x1xf32>
    %395 = arith.divf %393, %394 : vector<5x1xf32>
    %396 = vector.broadcast %395 : vector<5x1xf32> to vector<5x32xf32>
    %397 = arith.subf %387, %396 : vector<5x32xf32>
    %398 = arith.mulf %397, %397 : vector<5x32xf32>
    %cst_159 = arith.constant dense<0.000000e+00> : vector<5xf32>
    %399 = vector.multi_reduction <add>, %398, %cst_159 [1] : vector<5x32xf32> to vector<5xf32>
    %400 = vector.shape_cast %399 : vector<5xf32> to vector<5x1xf32>
    %cst_160 = arith.constant 3.200000e+01 : f32
    %401 = vector.broadcast %cst_160 : f32 to vector<5x1xf32>
    %402 = arith.divf %400, %401 : vector<5x1xf32>
    %403 = vector.broadcast %395 : vector<5x1xf32> to vector<5x32xf32>
    %404 = arith.subf %387, %403 : vector<5x32xf32>
    %cst_161 = arith.constant 9.99999974E-6 : f32
    %405 = vector.broadcast %cst_161 : f32 to vector<5x1xf32>
    %406 = arith.addf %402, %405 : vector<5x1xf32>
    %407 = math.rsqrt %406 : vector<5x1xf32>
    %408 = vector.broadcast %407 : vector<5x1xf32> to vector<5x32xf32>
    %409 = arith.mulf %404, %408 : vector<5x32xf32>
    %410 = vector.broadcast %389 : vector<1x32xf32> to vector<5x32xf32>
    %411 = arith.mulf %409, %410 : vector<5x32xf32>
    %412 = vector.broadcast %391 : vector<1x32xf32> to vector<5x32xf32>
    %413 = arith.addf %411, %412 : vector<5x32xf32>
    %c1_162 = arith.constant 1 : index
    %c0_163 = arith.constant 0 : index
    %c0_164 = arith.constant 0 : index
    %414 = vector.load %arg16[%c1_162, %c0_163, %c0_164] : memref<2x32x128xf32, #tpu.memory_space<vmem>>, vector<1x32x128xf32>
    %415 = vector.shape_cast %414 : vector<1x32x128xf32> to vector<32x128xf32>
    %416 = arith.truncf %413 : vector<5x32xf32> to vector<5x32xbf16>
    %417 = arith.truncf %415 : vector<32x128xf32> to vector<32x128xbf16>
    %cst_165 = arith.constant dense<0.000000e+00> : vector<5x128xf32>
    %418 = tpu.matmul %416, %417, %cst_165 {dimension_numbers = #tpu.dot_dimension_numbers<[1], [0], [0], [1], [0, 0, 1, 1], [], []>} : vector<5x32xbf16>, vector<32x128xbf16>, vector<5x128xf32> -> vector<5x128xf32>
    %c1_166 = arith.constant 1 : index
    %c0_167 = arith.constant 0 : index
    %c0_168 = arith.constant 0 : index
    %419 = vector.load %arg17[%c1_166, %c0_167, %c0_168] : memref<2x1x128xf32, #tpu.memory_space<vmem>>, vector<1x1x128xf32>
    %420 = vector.shape_cast %419 : vector<1x1x128xf32> to vector<1x128xf32>
    %421 = vector.broadcast %420 : vector<1x128xf32> to vector<5x128xf32>
    %422 = arith.addf %418, %421 : vector<5x128xf32>
    %cst_169 = arith.constant 1.702000e+00 : f32
    %423 = vector.broadcast %cst_169 : f32 to vector<5x128xf32>
    %424 = arith.mulf %423, %422 : vector<5x128xf32>
    %425 = arith.negf %424 : vector<5x128xf32>
    %426 = math.exp %425 : vector<5x128xf32>
    %cst_170 = arith.constant 1.000000e+00 : f32
    %427 = vector.broadcast %cst_170 : f32 to vector<5x128xf32>
    %428 = arith.addf %427, %426 : vector<5x128xf32>
    %429 = arith.divf %427, %428 : vector<5x128xf32>
    %430 = arith.mulf %422, %429 : vector<5x128xf32>
    %c1_171 = arith.constant 1 : index
    %c0_172 = arith.constant 0 : index
    %c0_173 = arith.constant 0 : index
    %431 = vector.load %arg18[%c1_171, %c0_172, %c0_173] : memref<2x128x32xf32, #tpu.memory_space<vmem>>, vector<1x128x32xf32>
    %432 = vector.shape_cast %431 : vector<1x128x32xf32> to vector<128x32xf32>
    %433 = arith.truncf %430 : vector<5x128xf32> to vector<5x128xbf16>
    %434 = arith.truncf %432 : vector<128x32xf32> to vector<128x32xbf16>
    %cst_174 = arith.constant dense<0.000000e+00> : vector<5x32xf32>
    %435 = tpu.matmul %433, %434, %cst_174 {dimension_numbers = #tpu.dot_dimension_numbers<[1], [0], [0], [1], [0, 0, 1, 1], [], []>} : vector<5x128xbf16>, vector<128x32xbf16>, vector<5x32xf32> -> vector<5x32xf32>
    %c1_175 = arith.constant 1 : index
    %c0_176 = arith.constant 0 : index
    %c0_177 = arith.constant 0 : index
    %436 = vector.load %arg19[%c1_175, %c0_176, %c0_177] : memref<2x1x32xf32, #tpu.memory_space<vmem>>, vector<1x1x32xf32>
    %437 = vector.shape_cast %436 : vector<1x1x32xf32> to vector<1x32xf32>
    %438 = vector.broadcast %437 : vector<1x32xf32> to vector<5x32xf32>
    %439 = arith.addf %435, %438 : vector<5x32xf32>
    %440 = arith.addf %387, %439 : vector<5x32xf32>
    %441 = vector.extract_strided_slice %440 {offsets = [0, 0], sizes = [1, 32], strides = [1, 1]} : vector<5x32xf32> to vector<1x32xf32>
    %c0_178 = arith.constant 0 : index
    %c0_179 = arith.constant 0 : index
    %442 = vector.load %arg20[%c0_178, %c0_179] : memref<1x32xf32, #tpu.memory_space<vmem>>, vector<1x32xf32>
    %c0_180 = arith.constant 0 : index
    %c0_181 = arith.constant 0 : index
    %443 = vector.load %arg21[%c0_180, %c0_181] : memref<1x32xf32, #tpu.memory_space<vmem>>, vector<1x32xf32>
    %cst_182 = arith.constant dense<0.000000e+00> : vector<1xf32>
    %444 = vector.multi_reduction <add>, %441, %cst_182 [1] : vector<1x32xf32> to vector<1xf32>
    %445 = vector.shape_cast %444 : vector<1xf32> to vector<1x1xf32>
    %cst_183 = arith.constant 3.200000e+01 : f32
    %446 = vector.broadcast %cst_183 : f32 to vector<1x1xf32>
    %447 = arith.divf %445, %446 : vector<1x1xf32>
    %448 = vector.broadcast %447 : vector<1x1xf32> to vector<1x32xf32>
    %449 = arith.subf %441, %448 : vector<1x32xf32>
    %450 = arith.mulf %449, %449 : vector<1x32xf32>
    %cst_184 = arith.constant dense<0.000000e+00> : vector<1xf32>
    %451 = vector.multi_reduction <add>, %450, %cst_184 [1] : vector<1x32xf32> to vector<1xf32>
    %452 = vector.shape_cast %451 : vector<1xf32> to vector<1x1xf32>
    %cst_185 = arith.constant 3.200000e+01 : f32
    %453 = vector.broadcast %cst_185 : f32 to vector<1x1xf32>
    %454 = arith.divf %452, %453 : vector<1x1xf32>
    %455 = vector.broadcast %447 : vector<1x1xf32> to vector<1x32xf32>
    %456 = arith.subf %441, %455 : vector<1x32xf32>
    %cst_186 = arith.constant 9.99999974E-6 : f32
    %457 = vector.broadcast %cst_186 : f32 to vector<1x1xf32>
    %458 = arith.addf %454, %457 : vector<1x1xf32>
    %459 = math.rsqrt %458 : vector<1x1xf32>
    %460 = vector.broadcast %459 : vector<1x1xf32> to vector<1x32xf32>
    %461 = arith.mulf %456, %460 : vector<1x32xf32>
    %462 = arith.mulf %461, %442 : vector<1x32xf32>
    %463 = arith.addf %462, %443 : vector<1x32xf32>
    %c0_187 = arith.constant 0 : index
    %c0_188 = arith.constant 0 : index
    %464 = vector.load %arg22[%c0_187, %c0_188] : memref<32x16xf32, #tpu.memory_space<vmem>>, vector<32x16xf32>
    %465 = arith.truncf %463 : vector<1x32xf32> to vector<1x32xbf16>
    %466 = arith.truncf %464 : vector<32x16xf32> to vector<32x16xbf16>
    %cst_189 = arith.constant dense<0.000000e+00> : vector<1x16xf32>
    %467 = tpu.matmul %465, %466, %cst_189 {dimension_numbers = #tpu.dot_dimension_numbers<[1], [0], [0], [1], [0, 0, 1, 1], [], []>} : vector<1x32xbf16>, vector<32x16xbf16>, vector<1x16xf32> -> vector<1x16xf32>
    %c0_190 = arith.constant 0 : index
    %c0_191 = arith.constant 0 : index
    %c0_192 = arith.constant 0 : index
    %468 = vector.load %arg23[%c0_190, %c0_191, %c0_192] : memref<1x1x16xf32, #tpu.memory_space<vmem>>, vector<1x1x16xf32>
    %469 = vector.shape_cast %468 : vector<1x1x16xf32> to vector<1x16xf32>
    %470 = vector.shape_cast %467 : vector<1x16xf32> to vector<1x1x16xf32>
    tpu.vector_store %arg23[%c0_190, %c0_191, %c0_192], %470 {strides = array<i32>} : memref<1x1x16xf32, #tpu.memory_space<vmem>>, vector<1x1x16xf32>,
    return
  }
  func.func @transform_0(%arg0: i32) -> (i32, i32, i32) {
    %c0_i32 = arith.constant 0 : i32
    %c0_i32_0 = arith.constant 0 : i32
    %c0_i32_1 = arith.constant 0 : i32
    return %arg0, %c0_i32, %c0_i32_0 : i32, i32, i32
  }
  func.func @transform_1(%arg0: i32) -> (i32, i32) {
    %c0_i32 = arith.constant 0 : i32
    %c0_i32_0 = arith.constant 0 : i32
    %c0_i32_1 = arith.constant 0 : i32
    return %c0_i32, %c0_i32_0 : i32, i32
  }
  func.func @transform_2(%arg0: i32) -> (i32, i32) {
    %c0_i32 = arith.constant 0 : i32
    %c0_i32_0 = arith.constant 0 : i32
    %c0_i32_1 = arith.constant 0 : i32
    return %c0_i32, %c0_i32_0 : i32, i32
  }
  func.func @transform_3(%arg0: i32) -> (i32, i32) {
    %c0_i32 = arith.constant 0 : i32
    %c0_i32_0 = arith.constant 0 : i32
    %c0_i32_1 = arith.constant 0 : i32
    return %c0_i32, %c0_i32_0 : i32, i32
  }
  func.func @transform_4(%arg0: i32) -> (i32, i32) {
    %c0_i32 = arith.constant 0 : i32
    %c0_i32_0 = arith.constant 0 : i32
    %c0_i32_1 = arith.constant 0 : i32
    return %c0_i32, %c0_i32_0 : i32, i32
  }
  func.func @transform_5(%arg0: i32) -> (i32, i32) {
    %c0_i32 = arith.constant 0 : i32
    %c0_i32_0 = arith.constant 0 : i32
    %c0_i32_1 = arith.constant 0 : i32
    return %c0_i32, %c0_i32_0 : i32, i32
  }
  func.func @transform_6(%arg0: i32) -> (i32, i32) {
    %c0_i32 = arith.constant 0 : i32
    %c0_i32_0 = arith.constant 0 : i32
    %c0_i32_1 = arith.constant 0 : i32
    return %c0_i32, %c0_i32_0 : i32, i32
  }
  func.func @transform_7(%arg0: i32) -> (i32, i32, i32) {
    %c0_i32 = arith.constant 0 : i32
    %c0_i32_0 = arith.constant 0 : i32
    %c0_i32_1 = arith.constant 0 : i32
    %c0_i32_2 = arith.constant 0 : i32
    return %c0_i32, %c0_i32_0, %c0_i32_1 : i32, i32, i32
  }
  func.func @transform_8(%arg0: i32) -> (i32, i32, i32) {
    %c0_i32 = arith.constant 0 : i32
    %c0_i32_0 = arith.constant 0 : i32
    %c0_i32_1 = arith.constant 0 : i32
    %c0_i32_2 = arith.constant 0 : i32
    return %c0_i32, %c0_i32_0, %c0_i32_1 : i32, i32, i32
  }
  func.func @transform_9(%arg0: i32) -> (i32, i32, i32) {
    %c0_i32 = arith.constant 0 : i32
    %c0_i32_0 = arith.constant 0 : i32
    %c0_i32_1 = arith.constant 0 : i32
    %c0_i32_2 = arith.constant 0 : i32
    return %c0_i32, %c0_i32_0, %c0_i32_1 : i32, i32, i32
  }
  func.func @transform_10(%arg0: i32) -> (i32, i32, i32) {
    %c0_i32 = arith.constant 0 : i32
    %c0_i32_0 = arith.constant 0 : i32
    %c0_i32_1 = arith.constant 0 : i32
    %c0_i32_2 = arith.constant 0 : i32
    return %c0_i32, %c0_i32_0, %c0_i32_1 : i32, i32, i32
  }
  func.func @transform_11(%arg0: i32) -> (i32, i32, i32) {
    %c0_i32 = arith.constant 0 : i32
    %c0_i32_0 = arith.constant 0 : i32
    %c0_i32_1 = arith.constant 0 : i32
    %c0_i32_2 = arith.constant 0 : i32
    return %c0_i32, %c0_i32_0, %c0_i32_1 : i32, i32, i32
  }
  func.func @transform_12(%arg0: i32) -> (i32, i32, i32) {
    %c0_i32 = arith.constant 0 : i32
    %c0_i32_0 = arith.constant 0 : i32
    %c0_i32_1 = arith.constant 0 : i32
    %c0_i32_2 = arith.constant 0 : i32
    return %c0_i32, %c0_i32_0, %c0_i32_1 : i32, i32, i32
  }
  func.func @transform_13(%arg0: i32) -> (i32, i32, i32) {
    %c0_i32 = arith.constant 0 : i32
    %c0_i32_0 = arith.constant 0 : i32
    %c0_i32_1 = arith.constant 0 : i32
    %c0_i32_2 = arith.constant 0 : i32
    return %c0_i32, %c0_i32_0, %c0_i32_1 : i32, i32, i32
  }
  func.func @transform_14(%arg0: i32) -> (i32, i32, i32) {
    %c0_i32 = arith.constant 0 : i32
    %c0_i32_0 = arith.constant 0 : i32
    %c0_i32_1 = arith.constant 0 : i32
    %c0_i32_2 = arith.constant 0 : i32
    return %c0_i32, %c0_i32_0, %c0_i32_1 : i32, i32, i32
  }
  func.func @transform_15(%arg0: i32) -> (i32, i32, i32) {
    %c0_i32 = arith.constant 0 : i32
    %c0_i32_0 = arith.constant 0 : i32
    %c0_i32_1 = arith.constant 0 : i32
    %c0_i32_2 = arith.constant 0 : i32
    return %c0_i32, %c0_i32_0, %c0_i32_1 : i32, i32, i32
  }
  func.func @transform_16(%arg0: i32) -> (i32, i32, i32) {
    %c0_i32 = arith.constant 0 : i32
    %c0_i32_0 = arith.constant 0 : i32
    %c0_i32_1 = arith.constant 0 : i32
    %c0_i32_2 = arith.constant 0 : i32
    return %c0_i32, %c0_i32_0, %c0_i32_1 : i32, i32, i32
  }
  func.func @transform_17(%arg0: i32) -> (i32, i32, i32) {
    %c0_i32 = arith.constant 0 : i32
    %c0_i32_0 = arith.constant 0 : i32
    %c0_i32_1 = arith.constant 0 : i32
    %c0_i32_2 = arith.constant 0 : i32
    return %c0_i32, %c0_i32_0, %c0_i32_1 : i32, i32, i32
  }
  func.func @transform_18(%arg0: i32) -> (i32, i32, i32) {
    %c0_i32 = arith.constant 0 : i32
    %c0_i32_0 = arith.constant 0 : i32
    %c0_i32_1 = arith.constant 0 : i32
    %c0_i32_2 = arith.constant 0 : i32
    return %c0_i32, %c0_i32_0, %c0_i32_1 : i32, i32, i32
  }
  func.func @transform_19(%arg0: i32) -> (i32, i32) {
    %c0_i32 = arith.constant 0 : i32
    %c0_i32_0 = arith.constant 0 : i32
    %c0_i32_1 = arith.constant 0 : i32
    return %c0_i32, %c0_i32_0 : i32, i32
  }
  func.func @transform_20(%arg0: i32) -> (i32, i32) {
    %c0_i32 = arith.constant 0 : i32
    %c0_i32_0 = arith.constant 0 : i32
    %c0_i32_1 = arith.constant 0 : i32
    return %c0_i32, %c0_i32_0 : i32, i32
  }
  func.func @transform_21(%arg0: i32) -> (i32, i32) {
    %c0_i32 = arith.constant 0 : i32
    %c0_i32_0 = arith.constant 0 : i32
    %c0_i32_1 = arith.constant 0 : i32
    return %c0_i32, %c0_i32_0 : i32, i32
  }
  func.func @transform_22(%arg0: i32) -> (i32, i32, i32) {
    %c0_i32 = arith.constant 0 : i32
    %c0_i32_0 = arith.constant 0 : i32
    %c0_i32_1 = arith.constant 0 : i32
    return %arg0, %c0_i32, %c0_i32_0 : i32, i32, i32
  }
}

</mosaic_0001>

<bundles_post_ra>
// kernel: mul.6
= control target key start
LH: loop header
LB: loop body
LE: loop exit
PB: predicated region body
PF: predicated region fallthrough
CT: control target
= control target key end

     0   :  { %vm9_vm0 = vcmask 523264   ;;  %s26_s8 = smov 64   ;;  %vm15_vm1 = vcmask 1048064   ;;  %s43_s0 = inlined_call_operand.vmem [shape: f32[3,64], index: 0, kind: input, shape index: {}]   ;;  %s44_s1 = inlined_call_operand.vmem [shape: f32[192], index: 1, kind: output, shape index: {}]  }
   0x1   :  { %v5_v0 = vld [vmem:[%s43_s0] sm:$0xf]  ;;  %s7_s0 = smov 3 }
   0x2   :  { %6 = vst [vmem:[#allocation1] sm:$0xf] %v5_v0 }
   0x9   :  { %v12_v1 = vld [vmem:[#allocation1 + $0x1] sm:$0x1]   ;;  %v8_v2 = vld [vmem:[#allocation1] ss:$2 sm:%s7_s0]  }
   0xa   :  { %13 = vrot.lane.b32.xlu0 %v12_v1, %s26_s8  ;;  %10 = vst.msk [vmem:[#allocation0] sm:$0x3] %vm9_vm0, %v8_v2  }
  0x7c   :  { %v14_v3 = vpop.permute.xlu0 %13  }
  0x7d   :  { %16 = vst.msk [vmem:[#allocation0] sm:$0x1] %vm15_vm1, %v14_v3  }
  0x84   :  { %v21_v4 = vld [vmem:[#allocation0] sm:$0x3] }
  0x85   :  { %24 = vst [vmem:[%s44_s1] sm:$0x3] %v21_v4 }

// kernel: mul.1
= control target key start
LH: loop header
LB: loop body
LE: loop exit
PB: predicated region body
PF: predicated region fallthrough
CT: control target
= control target key end

     0   :  { %s34_s0 = inlined_call_operand.vmem [shape: f32[192], index: 0, kind: input, shape index: {}]   ;;  %s35_s1 = inlined_call_operand.vmem [shape: f32[192], index: 1, kind: input, shape index: {}]   ;;  %s36_s2 = inlined_call_operand.vmem [shape: f32[192], index: 2, kind: output, shape index: {}]  }
   0x1   :  { %v3_v0 = vld [vmem:[%s34_s0] sm:$0x3] }
   0x2   :  { %v4_v1 = vld [vmem:[%s35_s1] sm:$0x3] }
   0x3   :  { %v7_v2 = vmul.f32 %v4_v1, %v3_v0 }
   0x5   :  { %9 = vst [vmem:[%s36_s2] sm:$0x3] %v7_v2 }

// kernel: clip_wrapper_forward.1
= control target key start
LH: loop header
LB: loop body
LE: loop exit
PB: predicated region body
PF: predicated region fallthrough
CT: control target
= control target key end

     0   :  { %s4196_s0 = inlined_call_operand.vmem [shape: f32[2,4,192], index: 0, kind: input, shape index: {}]   ;;  %s4197_s1 = inlined_call_operand.vmem [shape: f32[192,32], index: 1, kind: input, shape index: {}]   ;;  %s4198_s2 = inlined_call_operand.vmem [shape: f32[1,32], index: 2, kind: input, shape index: {}]   ;;  %s4199_s3 = inlined_call_operand.vmem [shape: f32[1,32], index: 3, kind: input, shape index: {}]   ;;  %s4200_s4 = inlined_call_operand.vmem [shape: f32[5,32], index: 4, kind: input, shape index: {}]   ;;  %s4201_s5 = inlined_call_operand.vmem [shape: f32[1,32], index: 5, kind: input, shape index: {}]   ;;  %s4202_s6 = inlined_call_operand.vmem [shape: f32[1,32], index: 6, kind: input, shape index: {}]   ;;  %s4203_s7 = inlined_call_operand.vmem [shape: f32[2,1,32], index: 7, kind: input, shape index: {}]   ;;  %s4204_s8 = inlined_call_operand.vmem [shape: f32[2,1,32], index: 8, kind: input, shape index: {}]   ;;  %s4205_s9 = inlined_call_operand.vmem [shape: f32[2,32,96], index: 9, kind: input, shape index: {}]   ;;  %s4206_s10 = inlined_call_operand.vmem [shape: f32[2,1,96], index: 10, kind: input, shape index: {}]   ;;  %s4207_s11 = inlined_call_operand.vmem [shape: f32[2,32,32], index: 11, kind: input, shape index: {}]   ;;  %s4208_s12 = inlined_call_operand.vmem [shape: f32[2,1,32], index: 12, kind: input, shape index: {}]   ;;  %s4209_s13 = inlined_call_operand.vmem [shape: f32[2,1,32], index: 13, kind: input, shape index: {}]   ;;  %s4210_s14 = inlined_call_operand.vmem [shape: f32[2,1,32], index: 14, kind: input, shape index: {}]   ;;  %s4211_s15 = inlined_call_operand.vmem [shape: f32[2,32,128], index: 15, kind: input, shape index: {}]   ;;  %s4212_s16 = inlined_call_operand.vmem [shape: f32[2,1,128], index: 16, kind: input, shape index: {}]   ;;  %s4213_s17 = inlined_call_operand.vmem [shape: f32[2,128,32], index: 17, kind: input, shape index: {}]   ;;  %s4214_s18 = inlined_call_operand.vmem [shape: f32[2,1,32], index: 18, kind: input, shape index: {}]   ;;  %s4215_s19 = inlined_call_operand.vmem [shape: f32[1,32], index: 19, kind: input, shape index: {}]   ;;  %s4216_s20 = inlined_call_operand.vmem [shape: f32[1,32], index: 20, kind: input, shape index: {}]   ;;  %s4217_s21 = inlined_call_operand.vmem [shape: f32[32,16], index: 21, kind: input, shape index: {}]   ;;  %s4218_s22 = inlined_call_operand.hbm [shape: f32[2,1,16], index: 22, kind: output, shape index: {}]  }
   0x1   :  { %4237 = sst [smem:[#allocation13_spill]] %s4196_s0 }
   0x2   :  { %4238 = sst [smem:[#allocation14_spill]] %s4197_s1 }
   0x3   :  { %4239 = sst [smem:[#allocation15_spill]] %s4198_s2 }
   0x4   :  { %4240 = sst [smem:[#allocation16_spill]] %s4199_s3 }
   0x5   :  { %4241 = sst [smem:[#allocation17_spill]] %s4200_s4 }
   0x6   :  { %4242 = sst [smem:[#allocation18_spill]] %s4201_s5 }
   0x7   :  { %4243 = sst [smem:[#allocation19_spill]] %s4202_s6 }
   0x8   :  { %4244 = sst [smem:[#allocation20_spill]] %s4203_s7 }
   0x9   :  { %4245 = sst [smem:[#allocation21_spill]] %s4218_s22 }
   0xa   :  { %27 = vsyncpa [#allocation4], 0 }
   0xb   :  { %29 = vsyncpa [#allocation4 + $0x1], 0  ;;  %s3482_s3 = smov 0   ;;  %s3484_s28 = smov 0  }
   0xc   :  { %s3486_s29 = smov 0   ;;  %s3488_s30 = smov 0  }
   0xd LB: > { %4246 = sst [smem:[#allocation6_spill]] %s3337_s3  ;;  %s3503_s4 = sadd.s32 4294967295, %s3349_s30   ;;  %s3349_s30 = sphi %s3488_s30, %s4276_s30   ;;  %s3345_s29 = sphi %s3486_s29, %s4281_s29   ;;  %s3341_s28 = sphi %s3484_s28, %s4280_s28   ;;  %s3337_s3 = sphi %s3482_s3, %s4279_s3  }
   0xe   : > { %4247 = sst [smem:[#allocation7_spill]] %s3345_s29  ;;  %s2780_s0 = sadd.s32 4294967294, %s3349_s30  }
   0xf   : > { %4248 = sst [smem:[#allocation8_spill]] %s3349_s30  ;;  %s3507_s23 = sadd.s32 1, %s3349_s30  }
  0x10   : > { %4249 = sst [smem:[#allocation9_spill]] %s3507_s23  ;;  %s509_s1 = sadd.s32 1, %s3345_s29 }
  0x11   : > { %s506_s5 = ssub.s32 %s3349_s30, %s3507_s23  ;;  %p519_p0 = scmp.ne.s32.totalorder %s3345_s29, %s3341_s28 }
  0x12   : > { %p507_p1 = scmp.eq.s32.totalorder %s506_s5, 0  ;;  %p520_p2 = scmp.eq.s32.totalorder %s3503_s4, 1 }
  0x13   : > { %p525_p3 = scmp.ne.s32.totalorder %s3341_s28, %s3337_s3  ;;  %p526_p4 = scmp.eq.s32.totalorder %s2780_s0, 1 }
  0x14   : > { %s3518_s24 = scalar_select %p507_p1, %s3345_s29, %s509_s1  }
  0x15   : > { %p3520_p5 = por %p520_p2, %p519_p0  ;;  %p3524_p6 = por %p526_p4, %p525_p3 }
  0x16   : > { %4250 = sst [smem:[#allocation10_spill]] %s3518_s24  ;;  %p2783_p7 = scmp.ge.s32.totalorder %s3349_s30, 1 }
  0x17   : > { %s4251_s6 = scalar_select %p3520_p5, 1, 0 }
  0x18   : > { %s4253_s25 = scalar_select %p3524_p6, 1, 0 }
  0x19   : > { %4252 = sst [smem:[#allocation11_spill]] %s4251_s6  ;;  %p615_p8 = scmp.lt.s32.totalorder %s3349_s30, 3 }
  0x1a   : > { %4254 = sst [smem:[#allocation12_spill]] %s4253_s25 }
  0x1b   : > { %p616_p9 = pnand %p2783_p7, %p615_p8 }
  0x1c   : > { %s4255_s27 = sld [smem:[#allocation14_spill]] (!%p616_p9)  ;;  %p676_p10 = scmp.lt.s32.totalorder (!%p616_p9), %s3503_s4, 1 }
  0x1d   : > { %619 = sbr.rel (%p616_p9) target bundleno = 9146 (0x23ba), region = 108  ;;  %s4256_s30 = sld [smem:[#allocation13_spill]] (!%p616_p9) }
  0x1e   : > { %s4257_s1 = sld [smem:[#allocation16_spill]] (!%p616_p9)  ;;  %s3354_s3 = smov (!%p616_p9), 96  }
  0x1f   : > { %s4258_s23 = sld [smem:[#allocation17_spill]] (!%p616_p9)  ;;  %s3356_s25 = smov (!%p616_p9), 64  }
  0x20   : > { %s4260_s0 = sld [smem:[#allocation18_spill]] (!%p616_p9)  ;;  %s4234_s6 = smov (!%p616_p9), 112  }
  0x21   : > { %s4262_s7 = sld [smem:[#allocation20_spill]] (!%p616_p9)  ;;  %s4232_s2 = smov (!%p616_p9), 72  }
  0x22   : > { %v697_v0 = vld [vmem:[%s4255_s27 + $0x70] sm:$0xff]  ;;  %v698_v1 = vld [vmem:[%s4255_s27 + $0x78] sm:$0xff]  ;;  %v695_v2 = vld [vmem:[%s4255_s27 + $0x60] sm:$0xff]  ;;  %v3351_v3 = vmov 0   ;;  %s677_s26 = scalar_select %p676_p10, %s3503_s4, 1  ;;  %vm731_vm0 = vcmask 523264  }
  0x23   : > { %735 = vmatprep.subr.bf16.mxu0 %v3351_v3  ;;  %v719_v4 = vpack.c.bf16 %v698_v1, %v697_v0  ;;  %v696_v5 = vld [vmem:[%s4255_s27 + $0x68] sm:$0xff]  ;;  %v693_v7 = vld [vmem:[%s4255_s27 + $0x50] sm:$0xff]  ;;  %v694_v8 = vld [vmem:[%s4255_s27 + $0x58] sm:$0xff]  ;;  %vm778_vm1 = vcmask 253952   ;;  %vm782_vm2 = vcmask 257024   ;;  %vm787_vm3 = vcmask 258048  }
  0x24   : > { %v718_v6 = vpack.c.bf16 %v696_v5, %v695_v2  ;;  %s2876_s5 = sshll.u32 %s677_s26, 3  ;;  %v717_v9 = vpack.c.bf16 %v694_v8, %v693_v7  ;;  %v691_v10 = vld [vmem:[%s4255_s27 + $0x40] sm:$0xff]  ;;  %v692_v11 = vld [vmem:[%s4255_s27 + $0x48] sm:$0xff]  ;;  %v689_v16 = vld [vmem:[%s4255_s27 + $0x30] sm:$0xff]  ;;  %vm3353_vm4 = vmmov 0   ;;  %vm859_vm5 = vcmask 261120  }
  0x25   : > { %736 = vmatpush1.bf16.msra.mxu0 %v719_v4  ;;  %s680_s22 = scalar_lea.vmem %s4256_s30, %s2876_s5  ;;  %v716_v14 = vpack.c.bf16 %v692_v11, %v691_v10  ;;  %v690_v17 = vld [vmem:[%s4255_s27 + $0x38] sm:$0xff]  ;;  %v687_v19 = vld [vmem:[%s4255_s27 + $0x20] sm:$0xff]  ;;  %v688_v20 = vld [vmem:[%s4255_s27 + $0x28] sm:$0xff]  ;;  %s4259_s30 = sld [smem:[#allocation15_spill]]  ;;  %vm913_vm6 = vcmask 64512   ;;  %vm960_vm7 = vcmask 36864  }
  0x26   : > { %737 = vmatprep.subr.bf16.mxu0 %v3351_v3  ;;  %v682_v12 = vld [vmem:[%s680_s22] sm:$0xff]  ;;  %v715_v18 = vpack.c.bf16 %v690_v17, %v689_v16  ;;  %v714_v21 = vpack.c.bf16 %v688_v20, %v687_v19  ;;  %v685_v22 = vld [vmem:[%s4255_s27 + $0x10] sm:$0xff]  ;;  %v686_v23 = vld [vmem:[%s4255_s27 + $0x18] sm:$0xff]  ;;  %s4261_s5 = sld [smem:[#allocation19_spill]]  ;;  %s3357_s26 = smov 120   ;;  %vm979_vm8 = vcmask 1041408  }
  0x27   : > { %v708_v13 = vcombine.high %v682_v12, %v682_v12  ;;  %v713_v24 = vpack.c.bf16 %v686_v23, %v685_v22  ;;  %v683_v25 = vld [vmem:[%s4255_s27] sm:$0xff]  ;;  %v684_v26 = vld [vmem:[%s4255_s27 + $0x8] sm:$0xff]  ;;  %v705_v28 = vld [vmem:[%s4255_s27 + $0xb0] sm:$0xff]  ;;  %v710_v40 = vpack.c.bf16 %v682_v12, %v682_v12  ;;  %vm980_vm9 = vcmask 1042432   ;;  %s4236_s22 = smov 56   ;;  %s4230_s24 = smov 104  }
  0x28   : > { %v712_v27 = vpack.c.bf16 %v684_v26, %v683_v25  ;;  %v706_v29 = vld [vmem:[%s4255_s27 + $0xb8] sm:$0xff]  ;;  %v703_v31 = vld [vmem:[%s4255_s27 + $0xa0] sm:$0xff]  ;;  %v704_v32 = vld [vmem:[%s4255_s27 + $0xa8] sm:$0xff]  ;;  %vm975_vm10 = vcmask 39936   ;;  %vm1144_vm11 = vcmask 1043456   ;;  %vm2710_vm12 = vcmask 122880  }
  0x29   : > { %738 = vmatpush1.bf16.msra.mxu0 %v718_v6  ;;  %v711_v15 = vpack.c.bf16 %v708_v13, %v708_v13  ;;  %v723_v30 = vpack.c.bf16 %v706_v29, %v705_v28  ;;  %v722_v33 = vpack.c.bf16 %v704_v32, %v703_v31  ;;  %v701_v34 = vld [vmem:[%s4255_s27 + $0x90] sm:$0xff]  ;;  %v702_v35 = vld [vmem:[%s4255_s27 + $0x98] sm:$0xff]  ;;  %v699_v37 = vld [vmem:[%s4255_s27 + $0x80] sm:$0xff]  ;;  %v3352_v13 = vmov 0.0  }
  0x2a   : > { %739 = vmatprep.subr.bf16.mxu0 %v3351_v3  ;;  %v721_v36 = vpack.c.bf16 %v702_v35, %v701_v34  ;;  %v700_v38 = vld [vmem:[%s4255_s27 + $0x88] sm:$0xff]  ;;  %v775_v41 = vld [vmem:[%s4257_s1] sm:$0x1]  ;;  %v780_v46 = vld [vmem:[%s4258_s23 + $0x1] sm:$0xf]  ;;  %2958 = vmatprep.subr.bf16.mxu1 %v3352_v13  ;;  %s4233_s1 = smov 48  }
  0x2b   : > { %2787 = vmatprep.mubr.msk.bf16.mxu0 %vm731_vm0, %v711_v15  ;;  %v720_v39 = vpack.c.bf16 %v700_v38, %v699_v37  ;;  %v776_v42 = vld [vmem:[%s4258_s23] sm:$0x1]  ;;  %v847_v10 = vld [vmem:[%s4205_s9 + $0x10] sm:$0xff]  ;;  %v848_v11 = vld [vmem:[%s4205_s9 + $0x18] sm:$0xff]  ;;  %2962 = vmatprep.mubr.msk.bf16.mxu1 %vm3353_vm4, %v3352_v13 }
  0x2c   : > { %v777_v43 = vadd.f32 %v776_v42, %v775_v41  ;;  %v2786_v44 = vld [vmem:[%s4259_s30] ss:$0 sm:$0xff]  ;;  %v846_v15 = vld [vmem:[%s4205_s9 + $0x8] sm:$0xff]  ;;  %s3355_s30 = smov 88  }
  0x2d   : > { %740 = vmatpush1.bf16.msra.mxu0 %v717_v9  ;;  %v2788_v63 = vld [vmem:[%s4260_s0] ss:$0 sm:$0xff]  ;;  %s4235_s0 = smov 80  }
  0x2e   : > { %741 = vmatprep.subr.bf16.mxu0 %v3351_v3  ;;  %779 = vst.msk [vmem:[#allocation2] sm:$0x1] %vm778_vm1, %v777_v43  ;;  %v2789_v1 = vld [vmem:[%s4261_s5] ss:$0 sm:$0xff]  ;;  %s4231_s5 = smov 40  }
  0x2f   : > { %v845_v12 = vld [vmem:[%s4205_s9] sm:$0xff] }
  0x30   : > { %v850_v16 = vpack.c.bf16 %v846_v15, %v845_v12  ;;  %v2791_v23 = vld [vmem:[%s4204_s8] ss:$0 sm:$0xff]  ;;  %v904_v15 = vld [vmem:[%s4207_s11 + $0x8] sm:$0xff] }
  0x31   : > { %742 = vmatpush1.bf16.msra.mxu0 %v716_v14  ;;  %v851_v14 = vpack.c.bf16 %v848_v11, %v847_v10 }
  0x32   : > { %743 = vmatprep.subr.bf16.mxu0 %v3351_v3 }
  0x33   : > { %2959 = vmatpush3.bf16.msra.mxu1 %v851_v14 }
  0x34   : > { %2960 = vmatprep.subr.bf16.mxu1 %v3352_v13 }
  0x35   : > { %744 = vmatpush1.bf16.msra.mxu0 %v715_v18 }
  0x36   : > { %745 = vmatprep.subr.bf16.mxu0 %v3351_v3 }
  0x37   : > { %2961 = vmatpush3.bf16.msra.mxu1 %v850_v16  ;;  %v1140_v16 = vpack.c.bf16 %v904_v15, %v904_v15 }
  0x38   : > { %2966 = vmatprep.subr.bf16.mxu1 %v3352_v13 }
  0x39   : > { %746 = vmatpush1.bf16.msra.mxu0 %v714_v21  ;;  %v2790_v21 = vld [vmem:[%s4262_s7] ss:$0 sm:$0xff] }
  0x3a   : > { %747 = vmatprep.subr.bf16.mxu0 %v3351_v3 }
  0x3d   : > { %748 = vmatpush1.bf16.msra.mxu0 %v713_v24 }
  0x3e   : > { %749 = vmatprep.subr.bf16.mxu0 %v3351_v3 }
  0x41   : > { %750 = vmatpush1.bf16.msra.mxu0 %v712_v27  ;;  %v2792_v27 = vld [vmem:[%s4206_s10] ss:$0 sm:$0xff] }
  0x42   : > { %759 = vmatprep.subr.bf16.mxu0 %v3351_v3 }
  0x45   : > { %760 = vmatpush2.bf16.msra.mxu0 %v723_v30 }
  0x46   : > { %761 = vmatprep.subr.bf16.mxu0 %v3351_v3 }
  0x49   : > { %762 = vmatpush2.bf16.msra.mxu0 %v722_v33 }
  0x4a   : > { %763 = vmatprep.subr.bf16.mxu0 %v3351_v3 }
  0x4d   : > { %764 = vmatpush2.bf16.msra.mxu0 %v721_v36 }
  0x4e   : > { %765 = vmatprep.subr.bf16.mxu0 %v3351_v3 }
  0x51   : > { %766 = vmatpush2.bf16.msra.mxu0 %v720_v39 }
  0x52   : > { %3008 = vmatprep.subr.bf16.mxu0 %v3352_v13 }
  0x54   : > { %768 = vmatmul.mubr.bf16.vlgmr.msra.gmra.mxu0 %v710_v40 }
  0x55   : > { %3010 = vmatprep.mubr.msk.bf16.mxu0 %vm3353_vm4, %v3352_v13 }
 0x114   : > { %v769_v45 = vpop.f32.mrf.mxu0 }
 0x115   : > { %v770_v47 = vadd.f32 %v2786_v44, %v769_v45 }
 0x116   : > { %v771_v48 = vpop.f32.mrf.mxu0 }
 0x117   : > { %v781_v49 = vadd.f32 %v780_v46, %v770_v47  ;;  %v3358_v48 = vmov 65535  }
 0x118   : > { %v772_v50 = vpop.f32.mrf.mxu0 }
 0x119   : > { %783 = vst.msk [vmem:[#allocation2 + $0x1] sm:$0xf] %vm782_vm2, %v781_v49  ;;  %v981_v49 = vsel %vm979_vm8, 4294967295, %v3358_v48 }
 0x11a   : > { %v773_v51 = vpop.f32.mrf.mxu0 }
 0x11b   : > { %v3698_v51 = vsel %vm980_vm9, %v981_v49, 0 }
 0x120   : > { %v784_v52 = vld [vmem:[#allocation2] sm:$0x1f] }
 0x121   : > { %v788_v53 = vsel %vm787_vm3, %v784_v52, 0.0 }
 0x122   : > { %789 = vadd.xlane.f32.xlu0 %v788_v53 }
 0x1ab   : > { %v790_v54 = vpop.xlane.xlu0 %789 }
 0x1ac   : > { %v792_v55 = vmul.f32 0.03125, %v790_v54 }
 0x1ae   : > { %v793_v56 = vsub.f32 %v784_v52, %v792_v55 }
 0x1b0   : > { %v794_v57 = vmul.f32 %v793_v56, %v793_v56 }
 0x1b2   : > { %v795_v58 = vsel %vm787_vm3, %v794_v57, 0.0 }
 0x1b3   : > { %796 = vadd.xlane.f32.xlu0 %v795_v58 }
 0x23c   : > { %v797_v59 = vpop.xlane.xlu0 %796 }
 0x23d   : > { %v798_v60 = vmul.f32 0.03125, %v797_v59 }
 0x23f   : > { %v799_v61 = vadd.f32 1e-05, %v798_v60 }
 0x241   : > { %3237 = vrsqrt.f32 %v799_v61 }
 0x24e   : > { %v3238_v62 = vpop.eup %3237 }
 0x24f   : > { %v801_v0 = vmul.f32 %v3238_v62, %v793_v56 }
 0x251   : > { %v808_v2 = vmul.f32 %v2788_v63, %v801_v0 }
 0x253   : > { %v3640_v3 = vadd.f32 %v2789_v1, %v808_v2 }
 0x255   : > { %v818_v4 = vsel %vm787_vm3, %v3640_v3, 0.0 }
 0x256   : > { %819 = vadd.xlane.f32.xlu1 %v818_v4 }
 0x2df   : > { %v820_v5 = vpop.xlane.xlu1 %819 }
 0x2e0   : > { %v821_v6 = vmul.f32 0.03125, %v820_v5 }
 0x2e2   : > { %v822_v7 = vsub.f32 %v3640_v3, %v821_v6 }
 0x2e4   : > { %v823_v8 = vmul.f32 %v822_v7, %v822_v7 }
 0x2e6   : > { %v824_v9 = vsel %vm787_vm3, %v823_v8, 0.0 }
 0x2e7   : > { %825 = vadd.xlane.f32.xlu1 %v824_v9 }
 0x370   : > { %v826_v17 = vpop.xlane.xlu1 %825 }
 0x371   : > { %v827_v18 = vmul.f32 0.03125, %v826_v17 }
 0x373   : > { %v828_v19 = vadd.f32 1e-05, %v827_v18 }
 0x375   : > { %3239 = vrsqrt.f32 %v828_v19 }
 0x382   : > { %v3240_v20 = vpop.eup %3239 }
 0x383   : > { %v830_v22 = vmul.f32 %v3240_v20, %v822_v7  ;;  %v1146_v20 = vsel %vm1144_vm11, %v1140_v16, 0 }
 0x385   : > { %v837_v24 = vmul.f32 %v2790_v21, %v830_v22  ;;  %v903_v21 = vld [vmem:[%s4207_s11] sm:$0xff] }
 0x386   : > { %v1027_v22 = vpack.c.bf16 %v903_v21, %v903_v21 }
 0x387   : > { %v844_v25 = vadd.f32 %v2791_v23, %v837_v24 }
 0x389   : > { %v849_v26 = vpack.c.bf16 %v844_v25, %v844_v25  ;;  %v1192_v25 = vsel %vm1144_vm11, %v1027_v22, 0  ;;  %v906_v22 = vld [vmem:[%s4207_s11 + $0x18] sm:$0xff] }
 0x38b   : > { %2963 = vmatmul.mubr.msk.bf16.vlgmr.msra.gmra.mxu1 %vm859_vm5, %v849_v26 }
 0x38c   : > { %2968 = vmatprep.mubr.msk.bf16.mxu1 %vm3353_vm4, %v3352_v13 }
 0x44b   : > { %v897_v28 = vpop.f32.mrf.mxu1 }
 0x44c   : > { %v898_v29 = vadd.f32 %v2792_v27, %v897_v28 }
 0x44d   : > { %v2964_v30 = vpop.f32.mrf.mxu1 }
 0x44e   : > { %v3678_v31 = vpack.c.bf16 %v898_v29, %v898_v29  ;;  %v907_v36 = vmul.f32 0.35355338, %v898_v29 }
 0x44f   : > { %v900_v32 = vpop.f32.mrf.mxu1 }
 0x450   : > { %911 = vrot.lane.b32.xlu0 %v3678_v31, %s3354_s3  ;;  %v3686_v37 = vpack.c.bf16 %v907_v36, %v907_v36 }
 0x451   : > { %v2965_v33 = vpop.f32.mrf.mxu1 }
 0x454   : > { %1031 = vrot.lane.b32.xlu0 %v3678_v31, %s3355_s30 }
 0x4c2   : > { %v912_v34 = vpop.permute.xlu0 %911 }
 0x4c3   : > { %v918_v35 = vsel %vm913_vm6, %v912_v34, 0 }
 0x4c4   : > { %2967 = vmatpush3.bf16.xpose.msra.mxu1 %v918_v35 }
 0x4c5   : > { %2972 = vmatprep.subr.bf16.mxu1 %v3352_v13 }
 0x4c6   : > { %v1032_v56 = vpop.permute.xlu0 %1031 }
 0x4c7   : > { %v1037_v58 = vsel %vm913_vm6, %v1032_v56, 0 }
 0x4cb   : > { %2969 = vmatmul.mubr.msk.bf16.vlgmr.msra.gmra.mxu1 %vm913_vm6, %v3686_v37 }
 0x4cc   : > { %2974 = vmatprep.mubr.msk.bf16.mxu1 %vm3353_vm4, %v3352_v13 }
 0x58b   : > { %v954_v38 = vpop.f32.mrf.mxu1 }
 0x58c   : > { %v961_v39 = vsel %vm960_vm7, %v954_v38, -inf }
 0x58d   : > { %962 = vmax.xlane.f32.xlu1 %v961_v39  ;;  %v2970_v40 = vpop.f32.mrf.mxu1 }
 0x58f   : > { %v957_v41 = vpop.f32.mrf.mxu1 }
 0x591   : > { %v2971_v42 = vpop.f32.mrf.mxu1 }
 0x616   : > { %v963_v43 = vpop.xlane.xlu1 %962 }
 0x617   : > { %v964_v44 = vsub.f32 %v954_v38, %v963_v43 }
 0x619   : > { %v965_v45 = vmul.f32 1.442695, %v964_v44 }
 0x61b   : > { %3241 = vpow2.f32 %v965_v45 }
 0x628   : > { %v3242_v46 = vpop.eup %3241 }
 0x629   : > { %v967_v47 = vsel %vm960_vm7, %v3242_v46, 0.0 }
 0x62a   : > { %968 = vadd.xlane.f32.xlu1 %v967_v47 }
 0x63b   : > { %973 = vrot.lane.b32.xlu1 %v3678_v31, %s3356_s25 }
 0x63f   : > { %1029 = vrot.lane.b32.xlu1 %v3686_v37, %s3357_s26 }
 0x6b3   : > { %v969_v50 = vpop.xlane.xlu1 %968 }
 0x6b4   : > { %3243 = vrcp.f32 %v969_v50 }
 0x6b7   : > { %v974_v52 = vpop.permute.xlu1 %973 }
 0x6b8   : > { %v984_v53 = vand.u32 %v3698_v51, %v974_v52 }
 0x6ba   : > { %2973 = vmatpush3.bf16.msra.mxu1 %v984_v53 }
 0x6bb   : > { %2978 = vmatprep.subr.bf16.mxu1 %v3352_v13  ;;  %v1030_v59 = vpop.permute.xlu1 %1029 }
 0x6c1   : > { %v3244_v54 = vpop.eup %3243 }
 0x6c2   : > { %v971_v55 = vmul.f32 %v3244_v54, %v3242_v46 }
 0x6c4   : > { %v972_v57 = vpack.c.bf16 %v971_v55, %v971_v55 }
 0x6c6   : > { %2975 = vmatmul.mubr.msk.bf16.vlgmr.msra.gmra.mxu1 %vm975_vm10, %v972_v57 }
 0x6c7   : > { %2979 = vmatpush3.bf16.xpose.msra.mxu1 %v1037_v58  ;;  %2980 = vmatprep.mubr.msk.bf16.mxu1 %vm3353_vm4, %v3352_v13 }
 0x6c8   : > { %2984 = vmatprep.subr.bf16.mxu1 %v3352_v13 }
 0x6ce   : > { %2981 = vmatmul.mubr.msk.bf16.vlgmr.msra.gmra.mxu1 %vm913_vm6, %v1030_v59 }
 0x6cf   : > { %2986 = vmatprep.mubr.msk.bf16.mxu1 %vm3353_vm4, %v3352_v13 }
 0x786   : > { %v1020_v60 = vpop.f32.mrf.mxu1 }
 0x787   : > { %v1026_v30 = vpack.c.bf16 %v1020_v60, %v1020_v60 }
 0x788   : > { %v2976_v61 = vpop.f32.mrf.mxu1 }
 0x78a   : > { %v1023_v62 = vpop.f32.mrf.mxu1 }
 0x78c   : > { %v2977_v63 = vpop.f32.mrf.mxu1 }
 0x78d   : > { %v905_v63 = vld [vmem:[%s4207_s11 + $0x10] sm:$0xff] }
 0x78e   : > { %v1073_v0 = vpop.f32.mrf.mxu1 }
 0x78f   : > { %v1079_v1 = vsel %vm960_vm7, %v1073_v0, -inf }
 0x790   : > { %1080 = vmax.xlane.f32.xlu0 %v1079_v1  ;;  %v2982_v2 = vpop.f32.mrf.mxu1 }
 0x792   : > { %v1076_v4 = vpop.f32.mrf.mxu1 }
 0x794   : > { %v2983_v5 = vpop.f32.mrf.mxu1 }
 0x7a6   : > { %1091 = vrot.lane.b32.xlu0 %v3678_v31, %s4236_s22  ;;  %s4268_s22 = smov 104  }
 0x7aa   : > { %1234 = vrot.lane.b32.xlu0 %v3686_v37, %s4234_s6  ;;  %s4267_s6 = smov 72  }
 0x819   : > { %v1081_v6 = vpop.xlane.xlu0 %1080 }
 0x81a   : > { %v1082_v7 = vsub.f32 %v1073_v0, %v1081_v6  ;;  %v1345_v0 = vpack.c.bf16 %v905_v63, %v905_v63 }
 0x81c   : > { %v1083_v8 = vmul.f32 1.442695, %v1082_v7  ;;  %v1350_v1 = vsel %vm1144_vm11, %v1345_v0, 0  ;;  %v2808_v0 = vld [vmem:[%s4210_s14] ss:$0 sm:$0xff] }
 0x81d   : > { %v1092_v9 = vpop.permute.xlu0 %1091 }
 0x81e   : > { %3245 = vpow2.f32 %v1083_v8  ;;  %v1097_v10 = vand.u32 %v1092_v9, %v3698_v51 }
 0x820   : > { %2985 = vmatpush3.bf16.msra.mxu1 %v1097_v10 }
 0x821   : > { %2990 = vmatprep.subr.bf16.mxu1 %v3352_v13  ;;  %v1235_v33 = vpop.permute.xlu0 %1234 }
 0x82b   : > { %v3246_v11 = vpop.eup %3245 }
 0x82c   : > { %v1085_v12 = vsel %vm960_vm7, %v3246_v11, 0.0 }
 0x82d   : > { %1086 = vadd.xlane.f32.xlu1 %v1085_v12 }
 0x83e   : > { %1236 = vrot.lane.b32.xlu1 %v3678_v31, %s4235_s0 }
 0x8b6   : > { %v1087_v14 = vpop.xlane.xlu1 %1086 }
 0x8b7   : > { %3247 = vrcp.f32 %v1087_v14 }
 0x8ba   : > { %v1237_v29 = vpop.permute.xlu1 %1236 }
 0x8bb   : > { %v1242_v32 = vsel %vm913_vm6, %v1237_v29, 0 }
 0x8c4   : > { %v3248_v17 = vpop.eup %3247 }
 0x8c5   : > { %v1089_v18 = vmul.f32 %v3248_v17, %v3246_v11 }
 0x8c7   : > { %v1090_v19 = vpack.c.bf16 %v1089_v18, %v1089_v18 }
 0x8c9   : > { %2987 = vmatmul.mubr.msk.bf16.vlgmr.msra.gmra.mxu1 %vm975_vm10, %v1090_v19 }
 0x8ca   : > { %2991 = vmatpush3.bf16.msra.mxu1 %v1146_v20  ;;  %2992 = vmatprep.mubr.msk.bf16.mxu1 %vm3353_vm4, %v3352_v13 }
 0x8cb   : > { %2996 = vmatprep.subr.bf16.mxu1 %v3352_v13 }
 0x989   : > { %v1133_v23 = vpop.f32.mrf.mxu1 }
 0x98a   : > { %v1139_v24 = vpack.c.bf16 %v1133_v23, %v1133_v23  ;;  %v1504_v23 = vpack.c.bf16 %v906_v22, %v906_v22  ;;  %v1660_v22 = vld [vmem:[%s4213_s17 + $0x28] sm:$0xff] }
 0x98b   : > { %v2988_v26 = vpop.f32.mrf.mxu1 }
 0x98c   : > { %2993 = vmatmul.mubr.msk.bf16.vlgmr.msra.gmra.mxu1 %vm913_vm6, %v1139_v24 }
 0x98d   : > { %v1136_v27 = vpop.f32.mrf.mxu1  ;;  %2997 = vmatpush3.bf16.msra.mxu1 %v1192_v25  ;;  %2998 = vmatprep.mubr.msk.bf16.mxu1 %vm3353_vm4, %v3352_v13  ;;  %v1509_v25 = vsel %vm1144_vm11, %v1504_v23, 0  ;;  %v1657_v23 = vld [vmem:[%s4213_s17 + $0x10] sm:$0xff] }
 0x98e   : > { %3002 = vmatprep.subr.bf16.mxu1 %v3352_v13 }
 0x98f   : > { %v2989_v28 = vpop.f32.mrf.mxu1 }
 0x994   : > { %2999 = vmatmul.mubr.msk.bf16.vlgmr.msra.gmra.mxu1 %vm913_vm6, %v1026_v30 }
 0x995   : > { %3003 = vmatpush3.bf16.xpose.msra.mxu1 %v1242_v32  ;;  %3004 = vmatprep.mubr.msk.bf16.mxu1 %vm3353_vm4, %v3352_v13 }
 0x996   : > { %3014 = vmatprep.subr.bf16.mxu1 %v3352_v13 }
 0x99c   : > { %3005 = vmatmul.mubr.msk.bf16.vlgmr.msra.gmra.mxu1 %vm913_vm6, %v1235_v33 }
 0x99d   : > { %3016 = vmatprep.mubr.msk.bf16.mxu1 %vm3353_vm4, %v3352_v13  ;;  %3015 = vmatpush3.bf16.msra.mxu1 %v1350_v1 }
 0x99e   : > { %3026 = vmatprep.subr.bf16.mxu1 %v3352_v13 }
 0xa4c   : > { %v1182_v34 = vpop.f32.mrf.mxu1 }
 0xa4e   : > { %v2994_v35 = vpop.f32.mrf.mxu1 }
 0xa50   : > { %v1185_v36 = vpop.f32.mrf.mxu1 }
 0xa52   : > { %v2995_v38 = vpop.f32.mrf.mxu1 }
 0xa54   : > { %v1228_v39 = vpop.f32.mrf.mxu1 }
 0xa55   : > { %v3744_v40 = vadd.f32 %v1228_v39, %v1182_v34 }
 0xa56   : > { %v3000_v41 = vpop.f32.mrf.mxu1 }
 0xa57   : > { %v2806_v41 = vld [vmem:[%s4208_s12] ss:$0 sm:$0xff] }
 0xa58   : > { %v1231_v42 = vpop.f32.mrf.mxu1 }
 0xa5a   : > { %v3001_v43 = vpop.f32.mrf.mxu1 }
 0xa5c   : > { %v1278_v44 = vpop.f32.mrf.mxu1 }
 0xa5d   : > { %v1284_v45 = vsel %vm960_vm7, %v1278_v44, -inf }
 0xa5e   : > { %1285 = vmax.xlane.f32.xlu1 %v1284_v45  ;;  %v3006_v46 = vpop.f32.mrf.mxu1 }
 0xa60   : > { %v1281_v47 = vpop.f32.mrf.mxu1 }
 0xa62   : > { %v3007_v48 = vpop.f32.mrf.mxu1 }
 0xa6f   : > { %1395 = vrot.lane.b32.xlu1 %v3678_v31, %s4232_s2  ;;  %s674_s2 = sand.u32 1, %s3341_s28  }
 0xa73   : > { %1393 = vrot.lane.b32.xlu1 %v3686_v37, %s4230_s24 }
 0xae7   : > { %v1286_v49 = vpop.xlane.xlu1 %1285 }
 0xae8   : > { %v1287_v50 = vsub.f32 %v1278_v44, %v1286_v49 }
 0xaea   : > { %v1288_v52 = vmul.f32 1.442695, %v1287_v50 }
 0xaeb   : > { %v1396_v59 = vpop.permute.xlu1 %1395 }
 0xaec   : > { %3249 = vpow2.f32 %v1288_v52  ;;  %v1401_v61 = vsel %vm913_vm6, %v1396_v59, 0 }
 0xaef   : > { %v1394_v62 = vpop.permute.xlu1 %1393 }
 0xaf9   : > { %v3250_v53 = vpop.eup %3249 }
 0xafa   : > { %v1290_v54 = vsel %vm960_vm7, %v3250_v53, 0.0 }
 0xafb   : > { %1291 = vadd.xlane.f32.xlu0 %v1290_v54  ;;  %v1593_v54 = vld [vmem:[%s4211_s15 + $0x18] sm:$0xff] }
 0xb11   : > { %1296 = vrot.lane.b32.xlu0 %v3678_v31, %s4233_s1 }
 0xb84   : > { %v1292_v55 = vpop.xlane.xlu0 %1291 }
 0xb85   : > { %3251 = vrcp.f32 %v1292_v55 }
 0xb88   : > { %v1297_v56 = vpop.permute.xlu0 %1296 }
 0xb89   : > { %v1302_v57 = vand.u32 %v1297_v56, %v3698_v51  ;;  %v1590_v56 = vld [vmem:[%s4211_s15] sm:$0xff] }
 0xb8b   : > { %3009 = vmatpush3.bf16.msra.mxu0 %v1302_v57  ;;  %v1591_v57 = vld [vmem:[%s4211_s15 + $0x8] sm:$0xff] }
 0xb8c   : > { %3020 = vmatprep.subr.bf16.mxu0 %v3352_v13 }
 0xb92   : > { %v3252_v37 = vpop.eup %3251 }
 0xb93   : > { %v1294_v58 = vmul.f32 %v3252_v37, %v3250_v53  ;;  %v1595_v37 = vpack.c.bf16 %v1591_v57, %v1590_v56 }
 0xb95   : > { %v1295_v60 = vpack.c.bf16 %v1294_v58, %v1294_v58 }
 0xb97   : > { %3011 = vmatmul.mubr.msk.bf16.vlgmr.msra.gmra.mxu0 %vm975_vm10, %v1295_v60 }
 0xb98   : > { %3021 = vmatpush3.bf16.xpose.msra.mxu0 %v1401_v61  ;;  %3022 = vmatprep.mubr.msk.bf16.mxu0 %vm3353_vm4, %v3352_v13 }
 0xb99   : > { %3032 = vmatprep.subr.bf16.mxu0 %v3352_v13 }
 0xb9f   : > { %3023 = vmatmul.mubr.msk.bf16.vlgmr.msra.gmra.mxu0 %vm913_vm6, %v1394_v62  ;;  %v2807_v62 = vld [vmem:[%s4209_s13] ss:$0 sm:$0xff] }
 0xba0   : > { %3034 = vmatprep.mubr.msk.bf16.mxu0 %vm3353_vm4, %v3352_v13  ;;  %3033 = vmatpush3.bf16.msra.mxu0 %v1509_v25 }
 0xba1   : > { %3046 = vmatprep.subr.bf16.mxu0 %v3352_v13 }
 0xc57   : > { %v1338_v2 = vpop.f32.mrf.mxu0 }
 0xc58   : > { %v1344_v4 = vpack.c.bf16 %v1338_v2, %v1338_v2 }
 0xc59   : > { %v3012_v5 = vpop.f32.mrf.mxu0 }
 0xc5a   : > { %3017 = vmatmul.mubr.msk.bf16.vlgmr.msra.gmra.mxu1 %vm913_vm6, %v1344_v4  ;;  %v1669_v5 = vld [vmem:[%s4213_s17 + $0x70] sm:$0xff] }
 0xc5b   : > { %v1341_v6 = vpop.f32.mrf.mxu0  ;;  %3028 = vmatprep.mubr.msk.bf16.mxu1 %vm3353_vm4, %v3352_v13 }
 0xc5c   : > { %v1670_v6 = vld [vmem:[%s4213_s17 + $0x78] sm:$0xff] }
 0xc5d   : > { %v3013_v7 = vpop.f32.mrf.mxu0 }
 0xc5e   : > { %v1679_v7 = vpack.c.bf16 %v1670_v6, %v1669_v5  ;;  %v2816_v5 = vld [vmem:[%s4204_s8 + $0x1] ss:$0 sm:$0xff] }
 0xc5f   : > { %v1437_v8 = vpop.f32.mrf.mxu0 }
 0xc60   : > { %v1443_v9 = vsel %vm960_vm7, %v1437_v8, -inf }
 0xc61   : > { %1444 = vmax.xlane.f32.xlu0 %v1443_v9  ;;  %v3024_v10 = vpop.f32.mrf.mxu0  ;;  %v1668_v9 = vld [vmem:[%s4213_s17 + $0x68] sm:$0xff] }
 0xc63   : > { %v1440_v11 = vpop.f32.mrf.mxu0 }
 0xc64   : > { %v1665_v11 = vld [vmem:[%s4213_s17 + $0x50] sm:$0xff] }
 0xc65   : > { %v3025_v12 = vpop.f32.mrf.mxu0 }
 0xc66   : > { %v1666_v12 = vld [vmem:[%s4213_s17 + $0x58] sm:$0xff] }
 0xc77   : > { %1455 = vrot.lane.b32.xlu0 %v3678_v31, %s4231_s5  ;;  %s4266_s5 = smov 48  }
 0xcea   : > { %v1445_v14 = vpop.xlane.xlu0 %1444 }
 0xceb   : > { %v1446_v15 = vsub.f32 %v1437_v8, %v1445_v14  ;;  %v1667_v8 = vld [vmem:[%s4213_s17 + $0x60] sm:$0xff]  ;;  %v1677_v14 = vpack.c.bf16 %v1666_v12, %v1665_v11 }
 0xcec   : > { %v1678_v10 = vpack.c.bf16 %v1668_v9, %v1667_v8  ;;  %v2822_v9 = vld [vmem:[%s4206_s10 + $0x1] ss:$0 sm:$0xff] }
 0xced   : > { %v1447_v16 = vmul.f32 1.442695, %v1446_v15  ;;  %v1663_v15 = vld [vmem:[%s4213_s17 + $0x40] sm:$0xff] }
 0xcee   : > { %v1456_v17 = vpop.permute.xlu0 %1455 }
 0xcef   : > { %3253 = vpow2.f32 %v1447_v16  ;;  %v1461_v18 = vand.u32 %v1456_v17, %v3698_v51  ;;  %v1664_v16 = vld [vmem:[%s4213_s17 + $0x48] sm:$0xff] }
 0xcf0   : > { %v1676_v17 = vpack.c.bf16 %v1664_v16, %v1663_v15 }
 0xcf1   : > { %3027 = vmatpush3.bf16.msra.mxu1 %v1461_v18  ;;  %v1661_v18 = vld [vmem:[%s4213_s17 + $0x30] sm:$0xff] }
 0xcf2   : > { %3038 = vmatprep.subr.bf16.mxu1 %v3352_v13 }
 0xcfc   : > { %v3254_v19 = vpop.eup %3253 }
 0xcfd   : > { %v1449_v20 = vsel %vm960_vm7, %v3254_v19, 0.0 }
 0xcfe   : > { %1450 = vadd.xlane.f32.xlu1 %v1449_v20 }
 0xd1a   : > { %v1386_v21 = vpop.f32.mrf.mxu1 }
 0xd1b   : > { %v1392_v31 = vadd.f32 %v1386_v21, %v3744_v40  ;;  %v1659_v21 = vld [vmem:[%s4213_s17 + $0x20] sm:$0xff] }
 0xd1c   : > { %v3018_v24 = vpop.f32.mrf.mxu1 }
 0xd1d   : > { %v1658_v24 = vld [vmem:[%s4213_s17 + $0x18] sm:$0xff] }
 0xd1e   : > { %v1389_v26 = vpop.f32.mrf.mxu1  ;;  %v1673_v25 = vpack.c.bf16 %v1658_v24, %v1657_v23 }
 0xd1f   : > { %v1655_v26 = vld [vmem:[%s4213_s17] sm:$0xff] }
 0xd20   : > { %v3019_v27 = vpop.f32.mrf.mxu1 }
 0xd21   : > { %v1656_v27 = vld [vmem:[%s4213_s17 + $0x8] sm:$0xff] }
 0xd87   : > { %v1451_v28 = vpop.xlane.xlu1 %1450 }
 0xd88   : > { %3255 = vrcp.f32 %v1451_v28  ;;  %v1672_v28 = vpack.c.bf16 %v1656_v27, %v1655_v26 }
 0xd95   : > { %v3256_v29 = vpop.eup %3255 }
 0xd96   : > { %v1453_v30 = vmul.f32 %v3256_v29, %v3254_v19  ;;  %v1662_v19 = vld [vmem:[%s4213_s17 + $0x38] sm:$0xff]  ;;  %v2809_v29 = vld [vmem:[%s4212_s16] ss:$0 sm:$0xff] }
 0xd97   : > { %v1675_v20 = vpack.c.bf16 %v1662_v19, %v1661_v18 }
 0xd98   : > { %v1454_v32 = vpack.c.bf16 %v1453_v30, %v1453_v30 }
 0xd9a   : > { %3029 = vmatmul.mubr.msk.bf16.vlgmr.msra.gmra.mxu1 %vm975_vm10, %v1454_v32 }
 0xd9b   : > { %3042 = vmatprep.mubr.msk.bf16.mxu1 %vm3353_vm4, %v3352_v13 }
 0xe5a   : > { %v1497_v33 = vpop.f32.mrf.mxu1 }
 0xe5b   : > { %v1503_v34 = vpack.c.bf16 %v1497_v33, %v1497_v33 }
 0xe5c   : > { %v3030_v35 = vpop.f32.mrf.mxu1 }
 0xe5d   : > { %3035 = vmatmul.mubr.msk.bf16.vlgmr.msra.gmra.mxu0 %vm913_vm6, %v1503_v34 }
 0xe5e   : > { %v1500_v36 = vpop.f32.mrf.mxu1  ;;  %3062 = vmatprep.mubr.msk.bf16.mxu0 %vm3353_vm4, %v3352_v13  ;;  %3047 = vmatpush3.bf16.msra.mxu0 %v1679_v7 }
 0xe5f   : > { %3048 = vmatprep.subr.bf16.mxu0 %v3352_v13 }
 0xe60   : > { %v3031_v38 = vpop.f32.mrf.mxu1 }
 0xe62   : > { %3049 = vmatpush3.bf16.msra.mxu0 %v1678_v10 }
 0xe63   : > { %3050 = vmatprep.subr.bf16.mxu0 %v3352_v13 }
 0xe66   : > { %3051 = vmatpush3.bf16.msra.mxu0 %v1677_v14 }
 0xe67   : > { %3052 = vmatprep.subr.bf16.mxu0 %v3352_v13 }
 0xe6a   : > { %3053 = vmatpush3.bf16.msra.mxu0 %v1676_v17 }
 0xe6b   : > { %3054 = vmatprep.subr.bf16.mxu0 %v3352_v13 }
 0xe6e   : > { %3055 = vmatpush3.bf16.msra.mxu0 %v1675_v20 }
 0xe6f   : > { %3056 = vmatprep.subr.bf16.mxu0 %v3352_v13 }
 0xf1d   : > { %v1545_v39 = vpop.f32.mrf.mxu0 }
 0xf1e   : > { %v1551_v40 = vadd.f32 %v1545_v39, %v1392_v31  ;;  %v1674_v31 = vpack.c.bf16 %v1660_v22, %v1659_v21 }
 0xf1f   : > { %v3036_v42 = vpop.f32.mrf.mxu0 }
 0xf20   : > { %v1552_v43 = vadd.f32 %v1551_v40, %v3640_v3  ;;  %v1592_v3 = vld [vmem:[%s4211_s15 + $0x10] sm:$0xff]  ;;  %3057 = vmatpush3.bf16.msra.mxu0 %v1674_v31 }
 0xf21   : > { %v1548_v44 = vpop.f32.mrf.mxu0  ;;  %v1596_v55 = vpack.c.bf16 %v1593_v54, %v1592_v3  ;;  %3058 = vmatprep.subr.bf16.mxu0 %v3352_v13 }
 0xf22   : > { %v3794_v45 = vadd.f32 %v2806_v41, %v1552_v43  ;;  %v2812_v44 = vld [vmem:[%s4214_s18] ss:$0 sm:$0xff] }
 0xf23   : > { %v3037_v46 = vpop.f32.mrf.mxu0  ;;  %3039 = vmatpush3.bf16.msra.mxu1 %v1596_v55 }
 0xf24   : > { %v1563_v47 = vsel %vm787_vm3, %v3794_v45, 0.0  ;;  %3040 = vmatprep.subr.bf16.mxu1 %v3352_v13  ;;  %3059 = vmatpush3.bf16.msra.mxu0 %v1673_v25 }
 0xf25   : > { %1564 = vadd.xlane.f32.xlu1 %v1563_v47  ;;  %3060 = vmatprep.subr.bf16.mxu0 %v3352_v13 }
 0xf27   : > { %3041 = vmatpush3.bf16.msra.mxu1 %v1595_v37  ;;  %v2819_v37 = vld [vmem:[%s4205_s9 + $0x30] sm:$0xff] }
 0xf28   : > { %3066 = vmatprep.subr.bf16.mxu1 %v3352_v13  ;;  %3061 = vmatpush3.bf16.msra.mxu0 %v1672_v28 }
 0xf29   : > { %3092 = vmatprep.subr.bf16.mxu0 %v3352_v13 }
 0xfae   : > { %v1565_v48 = vpop.xlane.xlu1 %1564 }
 0xfaf   : > { %v1566_v49 = vmul.f32 0.03125, %v1565_v48 }
 0xfb1   : > { %v1567_v50 = vsub.f32 %v3794_v45, %v1566_v49 }
 0xfb3   : > { %v1568_v52 = vmul.f32 %v1567_v50, %v1567_v50 }
 0xfb5   : > { %v1569_v53 = vsel %vm787_vm3, %v1568_v52, 0.0 }
 0xfb6   : > { %1570 = vadd.xlane.f32.xlu1 %v1569_v53 }
0x103f   : > { %v1571_v58 = vpop.xlane.xlu1 %1570 }
0x1040   : > { %v1572_v59 = vmul.f32 0.03125, %v1571_v58 }
0x1042   : > { %v1573_v60 = vadd.f32 1e-05, %v1572_v59  ;;  %v2817_v59 = vld [vmem:[%s4205_s9 + $0x20] sm:$0xff] }
0x1044   : > { %3257 = vrsqrt.f32 %v1573_v60  ;;  %v2818_v60 = vld [vmem:[%s4205_s9 + $0x28] sm:$0xff] }
0x1051   : > { %v3258_v61 = vpop.eup %3257 }
0x1052   : > { %v1575_v63 = vmul.f32 %v3258_v61, %v1567_v50  ;;  %v1765_v61 = vpack.c.bf16 %v2818_v60, %v2817_v59 }
0x1054   : > { %v1582_v1 = vmul.f32 %v2807_v62, %v1575_v63 }
0x1056   : > { %v1589_v2 = vadd.f32 %v2808_v0, %v1582_v1 }
0x1058   : > { %v1594_v4 = vpack.c.bf16 %v1589_v2, %v1589_v2  ;;  %v2815_v2 = vld [vmem:[%s4262_s7 + $0x1] ss:$0 sm:$0xff] }
0x105a   : > { %3043 = vmatmul.mubr.msk.bf16.vlgmr.msra.gmra.mxu1 %vm859_vm5, %v1594_v4 }
0x105b   : > { %3070 = vmatprep.mubr.msk.bf16.mxu1 %vm3353_vm4, %v3352_v13 }
0x111a   : > { %v1641_v30 = vpop.f32.mrf.mxu1 }
0x111b   : > { %v1642_v32 = vadd.f32 %v2809_v29, %v1641_v30 }
0x111c   : > { %v3044_v33 = vpop.f32.mrf.mxu1 }
0x111d   : > { %v2811_v34 = vmul.f32 -1.702, %v1642_v32 }
0x111e   : > { %v1644_v35 = vpop.f32.mrf.mxu1 }
0x111f   : > { %v1649_v36 = vmul.f32 1.442695, %v2811_v34 }
0x1120   : > { %v3045_v38 = vpop.f32.mrf.mxu1 }
0x1121   : > { %3259 = vpow2.f32 %v1649_v36 }
0x112e   : > { %v3260_v39 = vpop.eup %3259 }
0x112f   : > { %v1651_v40 = vadd.f32 1.0, %v3260_v39 }
0x1131   : > { %3261 = vrcp.f32 %v1651_v40 }
0x113e   : > { %v3262_v41 = vpop.eup %3261 }
0x113f   : > { %v1654_v42 = vmul.f32 %v3262_v41, %v1642_v32 }
0x1141   : > { %v1671_v43 = vpack.c.bf16 %v1654_v42, %v1654_v42 }
0x1143   : > { %3063 = vmatmul.mubr.bf16.vlgmr.msra.gmra.mxu0 %v1671_v43 }
0x1144   : > { %3094 = vmatprep.mubr.msk.bf16.mxu0 %vm3353_vm4, %v3352_v13 }
0x1203   : > { %v1721_v46 = vpop.f32.mrf.mxu0 }
0x1204   : > { %v1722_v47 = vadd.f32 %v2812_v44, %v1721_v46 }
0x1205   : > { %v3064_v48 = vpop.f32.mrf.mxu0 }
0x1206   : > { %v3888_v49 = vadd.f32 %v1722_v47, %v3794_v45  ;;  %v2820_v45 = vld [vmem:[%s4205_s9 + $0x38] sm:$0xff] }
0x1207   : > { %v1724_v50 = vpop.f32.mrf.mxu0  ;;  %v1766_v58 = vpack.c.bf16 %v2820_v45, %v2819_v37 }
0x1208   : > { %v1732_v52 = vsel %vm787_vm3, %v3888_v49, 0.0 }
0x1209   : > { %1733 = vadd.xlane.f32.xlu1 %v1732_v52  ;;  %v3065_v53 = vpop.f32.mrf.mxu0  ;;  %3067 = vmatpush3.bf16.msra.mxu1 %v1766_v58 }
0x120a   : > { %3068 = vmatprep.subr.bf16.mxu1 %v3352_v13 }
0x120d   : > { %3069 = vmatpush3.bf16.msra.mxu1 %v1765_v61  ;;  %v2824_v61 = vld [vmem:[%s4207_s11 + $0x20] sm:$0xff] }
0x120e   : > { %3074 = vmatprep.subr.bf16.mxu1 %v3352_v13 }
0x1292   : > { %v1734_v3 = vpop.xlane.xlu1 %1733 }
0x1293   : > { %v1735_v54 = vmul.f32 0.03125, %v1734_v3 }
0x1295   : > { %v1736_v55 = vsub.f32 %v3888_v49, %v1735_v54 }
0x1297   : > { %v1737_v56 = vmul.f32 %v1736_v55, %v1736_v55 }
0x1299   : > { %v1738_v57 = vsel %vm787_vm3, %v1737_v56, 0.0 }
0x129a   : > { %1739 = vadd.xlane.f32.xlu1 %v1738_v57  ;;  %v2825_v57 = vld [vmem:[%s4207_s11 + $0x28] sm:$0xff] }
0x129b   : > { %v2049_v37 = vpack.c.bf16 %v2825_v57, %v2825_v57 }
0x129d   : > { %v2054_v45 = vsel %vm1144_vm11, %v2049_v37, 0 }
0x1323   : > { %v1740_v62 = vpop.xlane.xlu1 %1739 }
0x1324   : > { %v1741_v63 = vmul.f32 0.03125, %v1740_v62  ;;  %v1936_v62 = vpack.c.bf16 %v2824_v61, %v2824_v61 }
0x1326   : > { %v1742_v0 = vadd.f32 1e-05, %v1741_v63 }
0x1328   : > { %3263 = vrsqrt.f32 %v1742_v0 }
0x1335   : > { %v3264_v1 = vpop.eup %3263 }
0x1336   : > { %v1744_v4 = vmul.f32 %v3264_v1, %v1736_v55 }
0x1338   : > { %v1751_v6 = vmul.f32 %v2815_v2, %v1744_v4  ;;  %v2100_v2 = vsel %vm1144_vm11, %v1936_v62, 0 }
0x133a   : > { %v1758_v7 = vadd.f32 %v2816_v5, %v1751_v6 }
0x133c   : > { %v1764_v8 = vpack.c.bf16 %v1758_v7, %v1758_v7 }
0x133e   : > { %3071 = vmatmul.mubr.msk.bf16.vlgmr.msra.gmra.mxu1 %vm859_vm5, %v1764_v8 }
0x133f   : > { %3076 = vmatprep.mubr.msk.bf16.mxu1 %vm3353_vm4, %v3352_v13 }
0x13fe   : > { %v1812_v10 = vpop.f32.mrf.mxu1 }
0x13ff   : > { %v1813_v11 = vadd.f32 %v2822_v9, %v1812_v10 }
0x1400   : > { %v3072_v12 = vpop.f32.mrf.mxu1 }
0x1401   : > { %v3920_v14 = vpack.c.bf16 %v1813_v11, %v1813_v11  ;;  %v1823_v19 = vmul.f32 0.35355338, %v1813_v11 }
0x1402   : > { %v1815_v15 = vpop.f32.mrf.mxu1 }
0x1403   : > { %1827 = vrot.lane.b32.xlu0 %v3920_v14, %s3354_s3  ;;  %v3926_v20 = vpack.c.bf16 %v1823_v19, %v1823_v19  ;;  %s4263_s3 = smov 56  }
0x1404   : > { %v3073_v16 = vpop.f32.mrf.mxu1 }
0x1475   : > { %v1828_v17 = vpop.permute.xlu0 %1827 }
0x1476   : > { %v1833_v18 = vsel %vm913_vm6, %v1828_v17, 0 }
0x1477   : > { %3075 = vmatpush3.bf16.xpose.msra.mxu1 %v1833_v18 }
0x1478   : > { %3080 = vmatprep.subr.bf16.mxu1 %v3352_v13 }
0x147e   : > { %3077 = vmatmul.mubr.msk.bf16.vlgmr.msra.gmra.mxu1 %vm913_vm6, %v3926_v20 }
0x147f   : > { %3082 = vmatprep.mubr.msk.bf16.mxu1 %vm3353_vm4, %v3352_v13 }
0x153e   : > { %v1869_v21 = vpop.f32.mrf.mxu1 }
0x153f   : > { %v1875_v22 = vsel %vm960_vm7, %v1869_v21, -inf }
0x1540   : > { %1876 = vmax.xlane.f32.xlu1 %v1875_v22  ;;  %v3078_v31 = vpop.f32.mrf.mxu1 }
0x1542   : > { %v1872_v23 = vpop.f32.mrf.mxu1 }
0x1544   : > { %v3079_v24 = vpop.f32.mrf.mxu1 }
0x1551   : > { %1887 = vrot.lane.b32.xlu1 %v3920_v14, %s3356_s25  ;;  %s4265_s25 = smov 112  }
0x1555   : > { %1940 = vrot.lane.b32.xlu1 %v3920_v14, %s3355_s30  ;;  %s4264_s30 = smov 80  }
0x1559   : > { %1938 = vrot.lane.b32.xlu1 %v3926_v20, %s3357_s26  ;;  %s2713_s26 = scalar_lea.sflag [#allocation4], %s674_s2 }
0x15c9   : > { %v1877_v25 = vpop.xlane.xlu1 %1876 }
0x15ca   : > { %v1878_v26 = vsub.f32 %v1869_v21, %v1877_v25 }
0x15cc   : > { %v1879_v27 = vmul.f32 1.442695, %v1878_v26 }
0x15cd   : > { %v1888_v28 = vpop.permute.xlu1 %1887 }
0x15ce   : > { %3265 = vpow2.f32 %v1879_v27  ;;  %v1893_v29 = vand.u32 %v1888_v28, %v3698_v51 }
0x15d0   : > { %3081 = vmatpush3.bf16.msra.mxu1 %v1893_v29 }
0x15d1   : > { %3086 = vmatprep.subr.bf16.mxu1 %v3352_v13  ;;  %v1941_v36 = vpop.permute.xlu1 %1940 }
0x15d2   : > { %v1946_v39 = vsel %vm913_vm6, %v1941_v36, 0 }
0x15d5   : > { %v1939_v40 = vpop.permute.xlu1 %1938 }
0x15db   : > { %v3266_v30 = vpop.eup %3265 }
0x15dc   : > { %v1881_v32 = vsel %vm960_vm7, %v3266_v30, 0.0 }
0x15dd   : > { %1882 = vadd.xlane.f32.xlu0 %v1881_v32 }
0x1666   : > { %v1883_v33 = vpop.xlane.xlu0 %1882 }
0x1667   : > { %3267 = vrcp.f32 %v1883_v33 }
0x1674   : > { %v3268_v34 = vpop.eup %3267 }
0x1675   : > { %v1885_v35 = vmul.f32 %v3268_v34, %v3266_v30 }
0x1677   : > { %v1886_v38 = vpack.c.bf16 %v1885_v35, %v1885_v35 }
0x1679   : > { %3083 = vmatmul.mubr.msk.bf16.vlgmr.msra.gmra.mxu1 %vm975_vm10, %v1886_v38 }
0x167a   : > { %3087 = vmatpush3.bf16.xpose.msra.mxu1 %v1946_v39  ;;  %3088 = vmatprep.mubr.msk.bf16.mxu1 %vm3353_vm4, %v3352_v13 }
0x167b   : > { %3098 = vmatprep.subr.bf16.mxu1 %v3352_v13 }
0x1681   : > { %3089 = vmatmul.mubr.msk.bf16.vlgmr.msra.gmra.mxu1 %vm913_vm6, %v1939_v40 }
0x1682   : > { %3100 = vmatprep.mubr.msk.bf16.mxu1 %vm3353_vm4, %v3352_v13  ;;  %3099 = vmatpush3.bf16.msra.mxu1 %v2054_v45 }
0x1683   : > { %3110 = vmatprep.subr.bf16.mxu1 %v3352_v13 }
0x1739   : > { %v1929_v41 = vpop.f32.mrf.mxu1 }
0x173a   : > { %v1935_v4 = vpack.c.bf16 %v1929_v41, %v1929_v41 }
0x173b   : > { %v3084_v42 = vpop.f32.mrf.mxu1 }
0x173d   : > { %v1932_v43 = vpop.f32.mrf.mxu1 }
0x173e   : > { %v2826_v43 = vld [vmem:[%s4207_s11 + $0x30] sm:$0xff] }
0x173f   : > { %v3085_v44 = vpop.f32.mrf.mxu1 }
0x1740   : > { %v2253_v44 = vpack.c.bf16 %v2826_v43, %v2826_v43 }
0x1741   : > { %v1982_v46 = vpop.f32.mrf.mxu1 }
0x1742   : > { %v1988_v47 = vsel %vm960_vm7, %v1982_v46, -inf }
0x1743   : > { %1989 = vmax.xlane.f32.xlu1 %v1988_v47  ;;  %v3090_v48 = vpop.f32.mrf.mxu1 }
0x1745   : > { %v1985_v50 = vpop.f32.mrf.mxu1 }
0x1747   : > { %v3091_v52 = vpop.f32.mrf.mxu1 }
0x17cc   : > { %v1990_v53 = vpop.xlane.xlu1 %1989 }
0x17cd   : > { %v1991_v3 = vsub.f32 %v1982_v46, %v1990_v53  ;;  %v2258_v46 = vsel %vm1144_vm11, %v2253_v44, 0  ;;  %v2845_v44 = vld [vmem:[%s4210_s14 + $0x1] ss:$0 sm:$0xff] }
0x17cf   : > { %v1992_v54 = vmul.f32 1.442695, %v1991_v3 }
0x17d1   : > { %3269 = vpow2.f32 %v1992_v54 }
0x17de   : > { %v3270_v55 = vpop.eup %3269 }
0x17df   : > { %v1994_v56 = vsel %vm960_vm7, %v3270_v55, 0.0 }
0x17e0   : > { %1995 = vadd.xlane.f32.xlu0 %v1994_v56 }
0x17f6   : > { %2000 = vrot.lane.b32.xlu0 %v3920_v14, %s4263_s3  ;;  %s4269_s3 = smov 40  }
0x17fa   : > { %2144 = vrot.lane.b32.xlu0 %v3920_v14, %s4264_s30 }
0x17fe   : > { %2142 = vrot.lane.b32.xlu0 %v3926_v20, %s4265_s25 }
0x1869   : > { %v1996_v58 = vpop.xlane.xlu0 %1995 }
0x186a   : > { %3271 = vrcp.f32 %v1996_v58 }
0x186d   : > { %v2001_v59 = vpop.permute.xlu0 %2000 }
0x186e   : > { %v2006_v60 = vand.u32 %v2001_v59, %v3698_v51 }
0x1870   : > { %3093 = vmatpush3.bf16.msra.mxu0 %v2006_v60 }
0x1871   : > { %3104 = vmatprep.subr.bf16.mxu0 %v3352_v13  ;;  %v2145_v5 = vpop.permute.xlu0 %2144 }
0x1872   : > { %v2150_v9 = vsel %vm913_vm6, %v2145_v5, 0 }
0x1875   : > { %v2143_v15 = vpop.permute.xlu0 %2142 }
0x1877   : > { %v3272_v63 = vpop.eup %3271 }
0x1878   : > { %v1998_v0 = vmul.f32 %v3272_v63, %v3270_v55  ;;  %v2827_v63 = vld [vmem:[%s4207_s11 + $0x38] sm:$0xff] }
0x187a   : > { %v1999_v1 = vpack.c.bf16 %v1998_v0, %v1998_v0 }
0x187c   : > { %3095 = vmatmul.mubr.msk.bf16.vlgmr.msra.gmra.mxu0 %vm975_vm10, %v1999_v1  ;;  %v2412_v1 = vpack.c.bf16 %v2827_v63, %v2827_v63  ;;  %v2858_v63 = vld [vmem:[%s4213_s17 + $0xa0] sm:$0xff] }
0x187d   : > { %3105 = vmatpush3.bf16.msra.mxu0 %v2100_v2  ;;  %3106 = vmatprep.mubr.msk.bf16.mxu0 %vm3353_vm4, %v3352_v13 }
0x187e   : > { %3116 = vmatprep.subr.bf16.mxu0 %v3352_v13 }
0x1884   : > { %3107 = vmatmul.mubr.msk.bf16.vlgmr.msra.gmra.mxu0 %vm913_vm6, %v1935_v4  ;;  %v2417_v4 = vsel %vm1144_vm11, %v2412_v1, 0 }
0x1885   : > { %3118 = vmatprep.mubr.msk.bf16.mxu0 %vm3353_vm4, %v3352_v13 }
0x193c   : > { %v2042_v6 = vpop.f32.mrf.mxu0 }
0x193d   : > { %v2048_v7 = vpack.c.bf16 %v2042_v6, %v2042_v6 }
0x193e   : > { %v3096_v8 = vpop.f32.mrf.mxu0 }
0x193f   : > { %3101 = vmatmul.mubr.msk.bf16.vlgmr.msra.gmra.mxu1 %vm913_vm6, %v2048_v7 }
0x1940   : > { %3111 = vmatpush3.bf16.xpose.msra.mxu1 %v2150_v9  ;;  %v2045_v10 = vpop.f32.mrf.mxu0  ;;  %3112 = vmatprep.mubr.msk.bf16.mxu1 %vm3353_vm4, %v3352_v13 }
0x1941   : > { %3122 = vmatprep.subr.bf16.mxu1 %v3352_v13 }
0x1942   : > { %v3097_v11 = vpop.f32.mrf.mxu0 }
0x1944   : > { %v3981_v12 = vpop.f32.mrf.mxu0 }
0x1946   : > { %v3108_v16 = vpop.f32.mrf.mxu0 }
0x1947   : > { %3113 = vmatmul.mubr.msk.bf16.vlgmr.msra.gmra.mxu1 %vm913_vm6, %v2143_v15 }
0x1948   : > { %v2139_v17 = vpop.f32.mrf.mxu0  ;;  %3124 = vmatprep.mubr.msk.bf16.mxu1 %vm3353_vm4, %v3352_v13  ;;  %3123 = vmatpush3.bf16.msra.mxu1 %v2258_v46 }
0x1949   : > { %3134 = vmatprep.subr.bf16.mxu1 %v3352_v13 }
0x194a   : > { %v3109_v18 = vpop.f32.mrf.mxu0 }
0x19ff   : > { %v3986_v19 = vpop.f32.mrf.mxu1 }
0x1a00   : > { %v2137_v61 = vadd.f32 %v3981_v12, %v3986_v19 }
0x1a01   : > { %v3102_v21 = vpop.f32.mrf.mxu1 }
0x1a02   : > { %v2841_v21 = vld [vmem:[%s4208_s12 + $0x1] ss:$0 sm:$0xff] }
0x1a03   : > { %v2093_v22 = vpop.f32.mrf.mxu1 }
0x1a05   : > { %v3103_v31 = vpop.f32.mrf.mxu1 }
0x1a07   : > { %v2186_v23 = vpop.f32.mrf.mxu1 }
0x1a08   : > { %v2192_v24 = vsel %vm960_vm7, %v2186_v23, -inf }
0x1a09   : > { %2193 = vmax.xlane.f32.xlu1 %v2192_v24  ;;  %v3114_v25 = vpop.f32.mrf.mxu1 }
0x1a0b   : > { %v2189_v26 = vpop.f32.mrf.mxu1 }
0x1a0d   : > { %v3115_v27 = vpop.f32.mrf.mxu1 }
0x1a1a   : > { %2204 = vrot.lane.b32.xlu1 %v3920_v14, %s4266_s5  ;;  %s2873_s5 = sshll.u32 %s3503_s4, 4  ;;  %s3366_s4 = smov [#allocation3]  }
0x1a1b   : > { %s3293_s7 = sshll.u32 %s3366_s4, 4  ;;  %s3294_s7 = int_to_ptr.vmem [resolvable:$false] %s3293_s7 }
0x1a1c   : > { %s3295_s0 = scalar_lea.vmem %s3294_s7, 32 }
0x1a1e   : > { %2303 = vrot.lane.b32.xlu1 %v3920_v14, %s4267_s6  ;;  %s675_s6 = scalar_lea.vmem [#allocation3], %s674_s2 }
0x1a22   : > { %2301 = vrot.lane.b32.xlu1 %v3926_v20, %s4268_s22  ;;  %s2725_s22 = sshll.u32 %s675_s6, 4  ;;  %s4157_s22 = int_to_ptr.vmem [resolvable:$true] %s2725_s22 }
0x1a23   : > { %s3289_s24 = scalar_lea.vmem %s4157_s22, 16  ;;  %p3296_p0 = scmp.lt.s32.totalorder %s4157_s22, %s3294_s7 }
0x1a24   : > { %p3290_p11 = scmp.ne.s32.totalorder %s4157_s22, %s3289_s24  ;;  %p3297_p1 = scmp.lt.s32.totalorder %s3295_s0, %s3289_s24 }
0x1a26   : > { %p3291_p12 = pnand %p3290_p11, %p3520_p5  ;;  %p3298_p2 = por %p3297_p1, %p3296_p0 }
0x1a28   : > { %p3292_p13 = pneg %p3291_p12 }
0x1a2a   : > { %p3299_p3 = pnand %p3298_p2, %p3292_p13 }
0x1a92   : > { %v2194_v28 = vpop.xlane.xlu1 %2193 }
0x1a93   : > { %v2195_v29 = vsub.f32 %v2186_v23, %v2194_v28 }
0x1a95   : > { %v2196_v30 = vmul.f32 1.442695, %v2195_v29 }
0x1a96   : > { %v2205_v32 = vpop.permute.xlu1 %2204 }
0x1a97   : > { %3273 = vpow2.f32 %v2196_v30  ;;  %v2210_v33 = vand.u32 %v2205_v32, %v3698_v51 }
0x1a99   : > { %3117 = vmatpush3.bf16.msra.mxu0 %v2210_v33  ;;  %v2849_v33 = vld [vmem:[%s4211_s15 + $0x38] sm:$0xff] }
0x1a9a   : > { %3128 = vmatprep.subr.bf16.mxu0 %v3352_v13  ;;  %v2304_v40 = vpop.permute.xlu1 %2303 }
0x1a9b   : > { %v2309_v41 = vsel %vm913_vm6, %v2304_v40, 0 }
0x1a9e   : > { %v2302_v42 = vpop.permute.xlu1 %2301 }
0x1aa4   : > { %v3274_v34 = vpop.eup %3273 }
0x1aa5   : > { %v2198_v35 = vsel %vm960_vm7, %v3274_v34, 0.0 }
0x1aa6   : > { %2199 = vadd.xlane.f32.xlu0 %v2198_v35  ;;  %v2846_v35 = vld [vmem:[%s4211_s15 + $0x20] sm:$0xff] }
0x1b2f   : > { %v2200_v36 = vpop.xlane.xlu0 %2199 }
0x1b30   : > { %3275 = vrcp.f32 %v2200_v36  ;;  %v2847_v36 = vld [vmem:[%s4211_s15 + $0x28] sm:$0xff] }
0x1b3d   : > { %v3276_v38 = vpop.eup %3275 }
0x1b3e   : > { %v2202_v39 = vmul.f32 %v3276_v38, %v3274_v34  ;;  %v2507_v38 = vpack.c.bf16 %v2847_v36, %v2846_v35  ;;  %v2662_v36 = vld [vmem:[%s4217_s21 + $0x10] sm:$0xff] }
0x1b40   : > { %v2203_v20 = vpack.c.bf16 %v2202_v39, %v2202_v39 }
0x1b42   : > { %3119 = vmatmul.mubr.msk.bf16.vlgmr.msra.gmra.mxu0 %vm975_vm10, %v2203_v20 }
0x1b43   : > { %3129 = vmatpush3.bf16.xpose.msra.mxu0 %v2309_v41  ;;  %3130 = vmatprep.mubr.msk.bf16.mxu0 %vm3353_vm4, %v3352_v13 }
0x1b44   : > { %3140 = vmatprep.subr.bf16.mxu0 %v3352_v13 }
0x1b4a   : > { %3131 = vmatmul.mubr.msk.bf16.vlgmr.msra.gmra.mxu0 %vm913_vm6, %v2302_v42  ;;  %v2844_v42 = vld [vmem:[%s4209_s13 + $0x1] ss:$0 sm:$0xff] }
0x1b4b   : > { %3142 = vmatprep.mubr.msk.bf16.mxu0 %vm3353_vm4, %v3352_v13  ;;  %3141 = vmatpush3.bf16.msra.mxu0 %v2417_v4  ;;  %v2857_v4 = vld [vmem:[%s4213_s17 + $0x98] sm:$0xff] }
0x1b4c   : > { %3154 = vmatprep.subr.bf16.mxu0 %v3352_v13 }
0x1c02   : > { %v2246_v47 = vpop.f32.mrf.mxu0 }
0x1c03   : > { %v2252_v48 = vpack.c.bf16 %v2246_v47, %v2246_v47 }
0x1c04   : > { %v3120_v50 = vpop.f32.mrf.mxu0 }
0x1c05   : > { %3125 = vmatmul.mubr.msk.bf16.vlgmr.msra.gmra.mxu1 %vm913_vm6, %v2252_v48  ;;  %v2868_v50 = vld [vmem:[%s4213_s17 + $0xf0] sm:$0xff] }
0x1c06   : > { %v2249_v52 = vpop.f32.mrf.mxu0  ;;  %3136 = vmatprep.mubr.msk.bf16.mxu1 %vm3353_vm4, %v3352_v13 }
0x1c07   : > { %v2869_v52 = vld [vmem:[%s4213_s17 + $0xf8] sm:$0xff] }
0x1c08   : > { %v3121_v53 = vpop.f32.mrf.mxu0 }
0x1c09   : > { %v2593_v53 = vpack.c.bf16 %v2869_v52, %v2868_v50 }
0x1c0a   : > { %v2345_v3 = vpop.f32.mrf.mxu0 }
0x1c0b   : > { %v2351_v54 = vsel %vm960_vm7, %v2345_v3, -inf }
0x1c0c   : > { %2352 = vmax.xlane.f32.xlu1 %v2351_v54  ;;  %v3132_v55 = vpop.f32.mrf.mxu0  ;;  %v2867_v54 = vld [vmem:[%s4213_s17 + $0xe8] sm:$0xff] }
0x1c0e   : > { %v2348_v56 = vpop.f32.mrf.mxu0 }
0x1c0f   : > { %v2864_v56 = vld [vmem:[%s4213_s17 + $0xd0] sm:$0xff] }
0x1c10   : > { %v3133_v57 = vpop.f32.mrf.mxu0 }
0x1c11   : > { %v2865_v57 = vld [vmem:[%s4213_s17 + $0xd8] sm:$0xff] }
0x1c95   : > { %v2353_v37 = vpop.xlane.xlu1 %2352 }
0x1c96   : > { %v2354_v45 = vsub.f32 %v2345_v3, %v2353_v37  ;;  %v2866_v3 = vld [vmem:[%s4213_s17 + $0xe0] sm:$0xff]  ;;  %v2591_v37 = vpack.c.bf16 %v2865_v57, %v2864_v56 }
0x1c97   : > { %v2592_v55 = vpack.c.bf16 %v2867_v54, %v2866_v3 }
0x1c98   : > { %v2355_v58 = vmul.f32 1.442695, %v2354_v45  ;;  %v2862_v45 = vld [vmem:[%s4213_s17 + $0xc0] sm:$0xff] }
0x1c9a   : > { %3277 = vpow2.f32 %v2355_v58  ;;  %v2863_v58 = vld [vmem:[%s4213_s17 + $0xc8] sm:$0xff] }
0x1ca7   : > { %v3278_v59 = vpop.eup %3277 }
0x1ca8   : > { %v2357_v60 = vsel %vm960_vm7, %v3278_v59, 0.0 }
0x1ca9   : > { %2358 = vadd.xlane.f32.xlu0 %v2357_v60  ;;  %v2860_v60 = vld [vmem:[%s4213_s17 + $0xb0] sm:$0xff] }
0x1cbf   : > { %2363 = vrot.lane.b32.xlu0 %v3920_v14, %s4269_s3  ;;  %s4271_s3 = sld [smem:[#allocation21_spill]] }
0x1cc5   : > { %v2294_v62 = vpop.f32.mrf.mxu1  ;;  %s4272_s25 = smov %s4271_s3  ;;  %s4155_s30 = scalar_lea.hbm %s4271_s3, %s2873_s5 }
0x1cc6   : > { %v2300_v0 = vadd.f32 %v2294_v62, %v2137_v61  ;;  %v2861_v61 = vld [vmem:[%s4213_s17 + $0xb8] sm:$0xff] }
0x1cc7   : > { %v3126_v2 = vpop.f32.mrf.mxu1  ;;  %v2589_v62 = vpack.c.bf16 %v2861_v61, %v2860_v60 }
0x1cc8   : > { %v2856_v2 = vld [vmem:[%s4213_s17 + $0x90] sm:$0xff] }
0x1cc9   : > { %v2297_v5 = vpop.f32.mrf.mxu1 }
0x1cca   : > { %v2587_v5 = vpack.c.bf16 %v2857_v4, %v2856_v2 }
0x1ccb   : > { %v3127_v6 = vpop.f32.mrf.mxu1 }
0x1ccc   : > { %v2854_v6 = vld [vmem:[%s4213_s17 + $0x80] sm:$0xff] }
0x1d32   : > { %v2359_v7 = vpop.xlane.xlu0 %2358 }
0x1d33   : > { %3279 = vrcp.f32 %v2359_v7  ;;  %v2855_v7 = vld [vmem:[%s4213_s17 + $0x88] sm:$0xff] }
0x1d36   : > { %v2364_v14 = vpop.permute.xlu0 %2363 }
0x1d37   : > { %v2369_v8 = vand.u32 %v2364_v14, %v3698_v51  ;;  %v2586_v14 = vpack.c.bf16 %v2855_v7, %v2854_v6 }
0x1d39   : > { %3135 = vmatpush3.bf16.msra.mxu1 %v2369_v8  ;;  %v2851_v8 = vld [vmem:[%s4212_s16 + $0x1] ss:$0 sm:$0xff] }
0x1d3a   : > { %3146 = vmatprep.subr.bf16.mxu1 %v3352_v13 }
0x1d40   : > { %v3280_v9 = vpop.eup %3279 }
0x1d41   : > { %v2361_v10 = vmul.f32 %v3280_v9, %v3278_v59  ;;  %v2590_v59 = vpack.c.bf16 %v2863_v58, %v2862_v45 }
0x1d43   : > { %v2362_v11 = vpack.c.bf16 %v2361_v10, %v2361_v10 }
0x1d45   : > { %3137 = vmatmul.mubr.msk.bf16.vlgmr.msra.gmra.mxu1 %vm975_vm10, %v2362_v11 }
0x1d46   : > { %3150 = vmatprep.mubr.msk.bf16.mxu1 %vm3353_vm4, %v3352_v13 }
0x1e05   : > { %v2405_v12 = vpop.f32.mrf.mxu1 }
0x1e06   : > { %v2411_v15 = vpack.c.bf16 %v2405_v12, %v2405_v12 }
0x1e07   : > { %v3138_v16 = vpop.f32.mrf.mxu1 }
0x1e08   : > { %3143 = vmatmul.mubr.msk.bf16.vlgmr.msra.gmra.mxu0 %vm913_vm6, %v2411_v15 }
0x1e09   : > { %v2408_v17 = vpop.f32.mrf.mxu1  ;;  %3170 = vmatprep.mubr.msk.bf16.mxu0 %vm3353_vm4, %v3352_v13  ;;  %3155 = vmatpush3.bf16.msra.mxu0 %v2593_v53 }
0x1e0a   : > { %3156 = vmatprep.subr.bf16.mxu0 %v3352_v13 }
0x1e0b   : > { %v3139_v51 = vpop.f32.mrf.mxu1 }
0x1e0d   : > { %3157 = vmatpush3.bf16.msra.mxu0 %v2592_v55 }
0x1e0e   : > { %3158 = vmatprep.subr.bf16.mxu0 %v3352_v13 }
0x1e11   : > { %3159 = vmatpush3.bf16.msra.mxu0 %v2591_v37 }
0x1e12   : > { %3160 = vmatprep.subr.bf16.mxu0 %v3352_v13 }
0x1e15   : > { %3161 = vmatpush3.bf16.msra.mxu0 %v2590_v59 }
0x1e16   : > { %3162 = vmatprep.subr.bf16.mxu0 %v3352_v13 }
0x1e19   : > { %3163 = vmatpush3.bf16.msra.mxu0 %v2589_v62 }
0x1e1a   : > { %3164 = vmatprep.subr.bf16.mxu0 %v3352_v13 }
0x1ec8   : > { %v2453_v18 = vpop.f32.mrf.mxu0 }
0x1ec9   : > { %v2459_v19 = vadd.f32 %v2453_v18, %v2300_v0  ;;  %v2859_v0 = vld [vmem:[%s4213_s17 + $0xa8] sm:$0xff] }
0x1eca   : > { %v3144_v22 = vpop.f32.mrf.mxu0  ;;  %v2588_v1 = vpack.c.bf16 %v2859_v0, %v2858_v63 }
0x1ecb   : > { %v2460_v31 = vadd.f32 %v2459_v19, %v3888_v49  ;;  %v2848_v49 = vld [vmem:[%s4211_s15 + $0x30] sm:$0xff] }
0x1ecc   : > { %v2456_v23 = vpop.f32.mrf.mxu0  ;;  %v2508_v34 = vpack.c.bf16 %v2849_v33, %v2848_v49  ;;  %3165 = vmatpush3.bf16.msra.mxu0 %v2588_v1 }
0x1ecd   : > { %v4037_v24 = vadd.f32 %v2841_v21, %v2460_v31  ;;  %3166 = vmatprep.subr.bf16.mxu0 %v3352_v13  ;;  %v2871_v31 = vld [vmem:[%s4214_s18 + $0x1] ss:$0 sm:$0xff] }
0x1ece   : > { %v3145_v25 = vpop.f32.mrf.mxu0  ;;  %3147 = vmatpush3.bf16.msra.mxu1 %v2508_v34 }
0x1ecf   : > { %v2474_v26 = vsel %vm787_vm3, %v4037_v24, 0.0  ;;  %3148 = vmatprep.subr.bf16.mxu1 %v3352_v13 }
0x1ed0   : > { %2475 = vadd.xlane.f32.xlu0 %v2474_v26  ;;  %3167 = vmatpush3.bf16.msra.mxu0 %v2587_v5 }
0x1ed1   : > { %3168 = vmatprep.subr.bf16.mxu0 %v3352_v13 }
0x1ed2   : > { %3149 = vmatpush3.bf16.msra.mxu1 %v2507_v38 }
0x1ed3   : > { %3174 = vmatprep.subr.bf16.mxu1 %v3352_v13 }
0x1ed4   : > { %3169 = vmatpush3.bf16.msra.mxu0 %v2586_v14 }
0x1f59   : > { %v2476_v27 = vpop.xlane.xlu0 %2475 }
0x1f5a   : > { %v2477_v28 = vmul.f32 0.03125, %v2476_v27 }
0x1f5c   : > { %v2478_v29 = vsub.f32 %v4037_v24, %v2477_v28 }
0x1f5e   : > { %v2479_v30 = vmul.f32 %v2478_v29, %v2478_v29 }
0x1f60   : > { %v2480_v32 = vsel %vm787_vm3, %v2479_v30, 0.0 }
0x1f61   : > { %2481 = vadd.xlane.f32.xlu1 %v2480_v32 }
0x1fea   : > { %v2482_v39 = vpop.xlane.xlu1 %2481 }
0x1feb   : > { %v2483_v40 = vmul.f32 0.03125, %v2482_v39  ;;  %v2660_v39 = vld [vmem:[%s4217_s21] sm:$0xff] }
0x1fed   : > { %v2484_v20 = vadd.f32 1e-05, %v2483_v40  ;;  %v2661_v40 = vld [vmem:[%s4217_s21 + $0x8] sm:$0xff] }
0x1fef   : > { %3281 = vrsqrt.f32 %v2484_v20  ;;  %v2665_v20 = vpack.c.bf16 %v2661_v40, %v2660_v39 }
0x1ffc   : > { %v3282_v41 = vpop.eup %3281 }
0x1ffd   : > { %v2486_v43 = vmul.f32 %v3282_v41, %v2478_v29 }
0x1fff   : > { %v2493_v46 = vmul.f32 %v2844_v42, %v2486_v43 }
0x2001   : > { %v2500_v47 = vadd.f32 %v2845_v44, %v2493_v46  ;;  %v2643_v46 = vld [vmem:[%s4215_s19] sm:$0x1] }
0x2003   : > { %v2506_v48 = vpack.c.bf16 %v2500_v47, %v2500_v47 }
0x2005   : > { %3151 = vmatmul.mubr.msk.bf16.vlgmr.msra.gmra.mxu1 %vm859_vm5, %v2506_v48  ;;  %v2644_v48 = vld [vmem:[%s4216_s20] sm:$0x1] }
0x2006   : > { %3178 = vmatprep.mubr.msk.bf16.mxu1 %vm3353_vm4, %v3352_v13 }
0x20c5   : > { %v2554_v9 = vpop.f32.mrf.mxu1 }
0x20c6   : > { %v2555_v10 = vadd.f32 %v2851_v8, %v2554_v9 }
0x20c7   : > { %v3152_v11 = vpop.f32.mrf.mxu1 }
0x20c8   : > { %v2853_v12 = vmul.f32 -1.702, %v2555_v10 }
0x20c9   : > { %v2557_v15 = vpop.f32.mrf.mxu1 }
0x20ca   : > { %v2562_v16 = vmul.f32 1.442695, %v2853_v12 }
0x20cb   : > { %v3153_v17 = vpop.f32.mrf.mxu1 }
0x20cc   : > { %3283 = vpow2.f32 %v2562_v16 }
0x20d9   : > { %v3284_v51 = vpop.eup %3283 }
0x20da   : > { %v2564_v18 = vadd.f32 1.0, %v3284_v51 }
0x20dc   : > { %3285 = vrcp.f32 %v2564_v18 }
0x20e9   : > { %v3286_v19 = vpop.eup %3285 }
0x20ea   : > { %v2567_v21 = vmul.f32 %v3286_v19, %v2555_v10 }
0x20ec   : > { %v2585_v22 = vpack.c.bf16 %v2567_v21, %v2567_v21 }
0x20ee   : > { %3171 = vmatmul.mubr.bf16.vlgmr.msra.gmra.mxu0 %v2585_v22 }
0x21ae   : > { %v2636_v23 = vpop.f32.mrf.mxu0 }
0x21af   : > { %v2637_v25 = vadd.f32 %v2871_v31, %v2636_v23 }
0x21b0   : > { %v3172_v26 = vpop.f32.mrf.mxu0 }
0x21b1   : > { %v2642_v27 = vadd.f32 %v2637_v25, %v4037_v24  ;;  %v2663_v24 = vld [vmem:[%s4217_s21 + $0x18] sm:$0xff] }
0x21b2   : > { %v2639_v28 = vpop.f32.mrf.mxu0  ;;  %v2666_v38 = vpack.c.bf16 %v2663_v24, %v2662_v36 }
0x21b3   : > { %v2645_v29 = vsel %vm778_vm1, %v2642_v27, 0.0 }
0x21b4   : > { %2646 = vadd.xlane.f32.xlu1 %v2645_v29  ;;  %v3173_v30 = vpop.f32.mrf.mxu0  ;;  %3175 = vmatpush3.bf16.msra.mxu1 %v2666_v38 }
0x21b5   : > { %3176 = vmatprep.subr.bf16.mxu1 %v3352_v13 }
0x21b8   : > { %3177 = vmatpush3.bf16.msra.mxu1 %v2665_v20 }
0x223d   : > { %v2647_v32 = vpop.xlane.xlu1 %2646 }
0x223e   : > { %v2648_v49 = vmul.f32 0.03125, %v2647_v32 }
0x2240   : > { %v2649_v33 = vsub.f32 %v2642_v27, %v2648_v49 }
0x2242   : > { %v2650_v34 = vmul.f32 %v2649_v33, %v2649_v33 }
0x2244   : > { %v2651_v35 = vsel %vm778_vm1, %v2650_v34, 0.0 }
0x2245   : > { %2652 = vadd.xlane.f32.xlu1 %v2651_v35 }
0x22ce   : > { %v2653_v41 = vpop.xlane.xlu1 %2652 }
0x22cf   : > { %v2654_v42 = vmul.f32 0.03125, %v2653_v41 }
0x22d1   : > { %v2655_v43 = vadd.f32 1e-05, %v2654_v42 }
0x22d3   : > { %3287 = vrsqrt.f32 %v2655_v43 }
0x22e0   : > { %v3288_v44 = vpop.eup %3287 }
0x22e1   : > { %v2657_v47 = vmul.f32 %v3288_v44, %v2649_v33 }
0x22e3   : > { %v2658_v50 = vmul.f32 %v2657_v47, %v2643_v46 }
0x22e5   : > { %v2659_v52 = vadd.f32 %v2658_v50, %v2644_v48 }
0x22e7   : > { %v2664_v53 = vpack.c.bf16 %v2659_v52, %v2659_v52 }
0x22e9   : > { %3179 = vmatmul.mubr.msk.bf16.vlgmr.msra.gmra.mxu1 %vm859_vm5, %v2664_v53 }
0x23a9   : > { %v2704_v13 = vpop.f32.mrf.mxu1 }
0x23aa   : > { %2711 = vst.msk [vmem:[%s675_s6] sm:$0x1] %vm2710_vm12, %v2704_v13 }
0x23ab   : > { %v3180_v3 = vpop.f32.mrf.mxu1 }
0x23ac   : > { %3302 = shalt.err (!%p3299_p3)
}
0x23ad   : > { %s3303_s5 = scalar_lea.hbm %s4155_s30, 16  ;;  %s3307_s1 = scalar_lea.hbm %s4272_s25, 32 }
0x23ae   : > { %p3304_p4 = scmp.ne.s32.totalorder %s4155_s30, %s3303_s5  ;;  %p3308_p9 = scmp.lt.s32.totalorder %s4155_s30, %s4272_s25 }
0x23af   : > { %p3309_p10 = scmp.lt.s32.totalorder %s3307_s1, %s3303_s5 }
0x23b0   : > { %p3305_p7 = pnand %p3304_p4, %p3520_p5 }
0x23b1   : > { %p3310_p11 = por %p3309_p10, %p3308_p9 }
0x23b2   : > { %p3306_p8 = pneg %p3305_p7 }
0x23b4   : > { %p3311_p12 = pnand %p3310_p11, %p3306_p8 }
0x23b6   : > { %3314 = shalt.err (!%p3311_p12)
}
0x23b7   : > { %3182 = dma.vmem_to_hbm [thread:$0]  (%p3520_p5), %s4157_s22, 16, %s4155_s30, %s2713_s26   ;;  %v2707_v54 = vpop.f32.mrf.mxu1 }
0x23b9   : > { %v3181_v55 = vpop.f32.mrf.mxu1 }
0x23ba PF: > { %s4273_s7 = sld [smem:[#allocation8_spill]] }
0x23bb   : > { %s4274_s24 = sld [smem:[#allocation6_spill]] }
0x23c0   : > { %p3188_p13 = scmp.ge.s32.totalorder %s4273_s7, 2 }
0x23c1   : > { %s2737_s2 = sand.u32 1, %s4274_s24  }
0x23c2   : > { %p3185_p0 = pnand %p3188_p13, %p3524_p6  ;;  %s2738_s5 = scalar_lea.sflag [#allocation4], %s2737_s2 }
0x23c4   : > { %p3186_p1 = pneg %p3185_p0 }
0x23c6   : > { %3332 = dma.done.wait (%p3186_p1), %s2738_s5, 16  }
0x23c7   : > { %3334 = vsyncadd (%p3186_p1), %s2738_s5, 4294967280  ;;  %s4276_s30 = sld [smem:[#allocation9_spill]]  ;;  %s4279_s3 = smov %s3341_s28 }
0x23c8   : > { %s4277_s29 = sld [smem:[#allocation7_spill]] }
0x23c9   : > { %s4278_s6 = sld [smem:[#allocation10_spill]] }
0x23cd   : > { %p32_p5 = scmp.ge.s32.totalorder %s4276_s30, 4  }
0x23ce   : > { %s4280_s28 = smov %s4277_s29 }
0x23cf   : > { %s4281_s29 = smov %s4278_s6  ;;  %34 = sbr.rel (!%p32_p5) target bundleno = 13 (0xd), region = 155 }
0x23d4   :  { %2742 = vsyncpa [#allocation4], 1 }
0x23d5   :  { %2744 = vsyncpa [#allocation4 + $0x1], 1 }

</bundles_post_ra>
